<compile_context>
chip_gen: v7x
topology: tpu7x:2x2x1
jax: 0.10.0
libtpu: 0.0.40
codegen_flags: <defaults>
</compile_context>

<pallas_src>
import functools

import jax
import jax.numpy as jnp
import numpy as np
from jax.experimental import pallas as pl
from jax.experimental.pallas import tpu as pltpu

EPS = 1e-5  # nn.InstanceNorm2d default eps


def _round_up(x, m):
    return ((x + m - 1) // m) * m


def _inorm_relu(t):
    """Instance norm (per channel over flattened spatial axis 0) + ReLU, one-pass stats."""
    mu = jnp.mean(t, axis=0, keepdims=True)
    tc = t - mu
    var = jnp.mean(tc * tc, axis=0, keepdims=True)
    return jnp.maximum(tc * jax.lax.rsqrt(var + EPS), 0.0)


def dsem_kernel(cols_ref, w1_ref, wloc_ref, wsur_ref, wred_loc_ref, wred_sur_ref,
                fc1w_ref, fc1b_ref, fc2w_ref, fc2b_ref,
                out_ref, pad_ref, *, Ho, Wo, d, PL):
    Cp = out_ref.shape[-1]
    HW = Ho * Wo
    Hp = Ho + 2 * d
    Wp = PL + Wo + d

    # --- conv1x1 block: single fused (HW, 9*Cin) @ (9*Cin, Cp) MXU matmul (bf16 in, f32 acc) ---
    acc = jnp.dot(cols_ref[0], w1_ref[...], preferred_element_type=jnp.float32)
    y = _inorm_relu(acc)                                        # (HW, Cp) f32

    # --- stage into the padded VMEM scratch.  Only the thin zero border is rewritten,
    #     but it IS rewritten every step (megacore-safe); interior is fully overwritten.
    #     Left pad PL is a multiple of 8 -> the big interior store is sublane-aligned. ---
    pad_ref[0:d, :, :] = jnp.zeros((d, Wp, Cp), jnp.float32)
    pad_ref[d + Ho:Hp, :, :] = jnp.zeros((d, Wp, Cp), jnp.float32)
    pad_ref[d:d + Ho, 0:PL, :] = jnp.zeros((Ho, PL, Cp), jnp.float32)
    pad_ref[d:d + Ho, PL + Wo:Wp, :] = jnp.zeros((Ho, d, Cp), jnp.float32)
    pad_ref[d:d + Ho, PL:PL + Wo, :] = y.reshape(Ho, Wo, Cp)

    # --- depthwise 3x3 convs: F_loc (dilation 1) and F_sur (dilation d), f32 VPU math ---
    def depthwise(w_ref, dil):
        a = None
        for kx in range(3):
            ox = PL + (kx - 1) * dil
            # One W-shifted slab per kx (3 sublane relayouts per conv instead of 9).
            slab = pad_ref[d - dil:d + Ho + dil, ox:ox + Wo, :]     # (Ho+2*dil, Wo, Cp)
            for ky in range(3):
                # ky offsets are leading-axis slices of the slab value: free.
                t = slab[ky * dil:ky * dil + Ho] * w_ref[ky * 3 + kx].reshape(1, 1, Cp)
                a = t if a is None else a + t
        return a.reshape(HW, Cp)

    # INReLU(2*nOut) on concat([loc, sur]) == per-channel IN of each half independently.
    loc = _inorm_relu(depthwise(wloc_ref, 1))
    sur = _inorm_relu(depthwise(wsur_ref, d))

    # --- 1x1 reduce, no concat: two K=Cp bf16 dots against the two weight halves ---
    r = (jnp.dot(loc.astype(jnp.bfloat16), wred_loc_ref[...],
                 preferred_element_type=jnp.float32)
         + jnp.dot(sur.astype(jnp.bfloat16), wred_sur_ref[...],
                   preferred_element_type=jnp.float32))            # (HW, Cp) f32

    # --- F_glo: GAP -> FC -> ReLU -> FC -> sigmoid -> channel scale.
    #     M=1 FC layers done on VPU/XLU (broadcast-mul + reduce); hidden padded only to 8. ---
    g = jnp.mean(r, axis=0, keepdims=True)                          # (1, Cp)
    h = jnp.maximum(jnp.sum(fc1w_ref[...] * g, axis=-1, keepdims=True)
                    + fc1b_ref[...], 0.0)                           # (HP, 1)
    s = jax.nn.sigmoid(jnp.sum(fc2w_ref[...] * h, axis=0, keepdims=True)
                       + fc2b_ref[...])                             # (1, Cp)

    out_ref[0] = (r * s).astype(out_ref.dtype)                      # lane-dense bf16 store


def _vmem_limit_bytes():
    """Per-generation scoped VMEM limit: ~100 MiB on 128 MiB parts (v5e/v6e),
    ~48 MiB on the 64 MiB v7x; conservative fallback if the query fails."""
    try:
        cap = int(pltpu.get_tpu_info().vmem_capacity_bytes)
        return int(min(cap - 16 * 1024 * 1024, 100 * 1024 * 1024))
    except Exception:
        return 48 * 1024 * 1024


def dsem_forward(x_nchw, params, dilation_rate=3):
    N, Cin, H, W = x_nchw.shape
    C = params["w1"].shape[0]
    hidden = params["fc1_w"].shape[0]
    Ho = (H + 2 - 3) // 2 + 1
    Wo = (W + 2 - 3) // 2 + 1
    HW = Ho * Wo
    d = dilation_rate
    Cp = _round_up(C, 128)                 # lane-dense channel axis
    HP = _round_up(max(hidden, 1), 8)      # hidden padded to 8 sublanes only
    PL = _round_up(max(d, 1), 8)           # sublane-aligned left pad of the scratch
    Kin = 9 * Cin

    # ---- glue: NCHW -> NHWC, pad 1, bf16 im2col of the stride-2 3x3 conv (tap-major K) ----
    x = jnp.transpose(x_nchw, (0, 2, 3, 1)).astype(jnp.bfloat16)
    xp = jnp.pad(x, ((0, 0), (1, 1), (1, 1), (0, 0)))
    cols = jnp.concatenate(
        [xp[:, ky:ky + 2 * Ho:2, kx:kx + 2 * Wo:2, :]
         for ky in range(3) for kx in range(3)], axis=-1).reshape(N, HW, Kin)

    # ---- glue: stage PyTorch-layout weights in the kernel layouts (MXU operands in bf16) ----
    w1 = jnp.transpose(params["w1"], (2, 3, 1, 0)).reshape(Kin, C)          # tap-major K
    w1 = jnp.pad(w1, ((0, 0), (0, Cp - C))).astype(jnp.bfloat16)
    wloc = jnp.pad(jnp.transpose(params["wloc"], (2, 3, 1, 0)).reshape(9, C),
                   ((0, 0), (0, Cp - C)))                                   # f32 (VPU)
    wsur = jnp.pad(jnp.transpose(params["wsur"], (2, 3, 1, 0)).reshape(9, C),
                   ((0, 0), (0, Cp - C)))                                   # f32 (VPU)
    wred2d = params["wred"][:, :, 0, 0]                                     # (C, 2C) [loc|sur]
    wred_loc = jnp.zeros((Cp, Cp), jnp.float32).at[:C, :C].set(
        wred2d[:, :C].T).astype(jnp.bfloat16)
    wred_sur = jnp.zeros((Cp, Cp), jnp.float32).at[:C, :C].set(
        wred2d[:, C:].T).astype(jnp.bfloat16)
    fc1w = jnp.zeros((HP, Cp), jnp.float32).at[:hidden, :C].set(params["fc1_w"])
    fc1b = jnp.zeros((HP, 1), jnp.float32).at[:hidden, 0].set(params["fc1_b"])
    fc2w = jnp.zeros((HP, Cp), jnp.float32).at[:hidden, :C].set(params["fc2_w"].T)
    fc2b = jnp.zeros((1, Cp), jnp.float32).at[0, :C].set(params["fc2_b"])

    grid_spec = pltpu.PrefetchScalarGridSpec(
        num_scalar_prefetch=0,
        grid=(N,),
        in_specs=[
            pl.BlockSpec((1, HW, Kin), lambda b: (b, 0, 0)),
            pl.BlockSpec((Kin, Cp), lambda b: (0, 0)),
            pl.BlockSpec((9, Cp), lambda b: (0, 0)),
            pl.BlockSpec((9, Cp), lambda b: (0, 0)),
            pl.BlockSpec((Cp, Cp), lambda b: (0, 0)),
            pl.BlockSpec((Cp, Cp), lambda b: (0, 0)),
            pl.BlockSpec((HP, Cp), lambda b: (0, 0)),
            pl.BlockSpec((HP, 1), lambda b: (0, 0)),
            pl.BlockSpec((HP, Cp), lambda b: (0, 0)),
            pl.BlockSpec((1, Cp), lambda b: (0, 0)),
        ],
        out_specs=pl.BlockSpec((1, HW, Cp), lambda b: (b, 0, 0)),
        scratch_shapes=[pltpu.VMEM((Ho + 2 * d, PL + Wo + d, Cp), jnp.float32)],
    )

    out_flat = pl.pallas_call(
        functools.partial(dsem_kernel, Ho=Ho, Wo=Wo, d=d, PL=PL),
        out_shape=jax.ShapeDtypeStruct((N, HW, Cp), jnp.bfloat16),
        grid_spec=grid_spec,
        compiler_params=pltpu.CompilerParams(
            dimension_semantics=("parallel",),          # batch elements independent
            vmem_limit_bytes=_vmem_limit_bytes(),       # generation-aware scoped limit
        ),
    )(cols, w1, wloc, wsur, wred_loc, wred_sur, fc1w, fc1b, fc2w, fc2b)

    # TODO(synk): fold this slice/cast/transpose into the consumer to avoid an
    # extra HBM pass when C << 128.
    out = out_flat[:, :, :C].astype(jnp.float32).reshape(N, Ho, Wo, C)
    return jnp.transpose(out, (0, 3, 1, 2))             # back to NCHW


# ---------------- pure-JAX reference (mirrors PyTorch module semantics) ----------------
_HI = jax.lax.Precision.HIGHEST


def _inorm_relu_ref(t):
    mu = jnp.mean(t, axis=(1, 2), keepdims=True)
    var = jnp.mean((t - mu) ** 2, axis=(1, 2), keepdims=True)
    return jnp.maximum((t - mu) * jax.lax.rsqrt(var + EPS), 0.0)


def dsem_reference(x_nchw, params, dilation_rate=3):
    x = jnp.transpose(x_nchw, (0, 2, 3, 1)).astype(jnp.float32)
    dn = ("NHWC", "HWIO", "NHWC")
    w1 = jnp.transpose(params["w1"], (2, 3, 1, 0))
    y = jax.lax.conv_general_dilated(x, w1, (2, 2), ((1, 1), (1, 1)),
                                     dimension_numbers=dn, precision=_HI)
    y = _inorm_relu_ref(y)

    def dw(inp, wd, d):
        k = jnp.transpose(wd, (2, 3, 1, 0))          # (3,3,1,C)
        return jax.lax.conv_general_dilated(
            inp, k, (1, 1), ((d, d), (d, d)), rhs_dilation=(d, d),
            dimension_numbers=dn, feature_group_count=inp.shape[-1], precision=_HI)

    loc = dw(y, params["wloc"], 1)
    sur = dw(y, params["wsur"], dilation_rate)
    joi = _inorm_relu_ref(jnp.concatenate([loc, sur], axis=-1))
    wred = jnp.transpose(params["wred"], (2, 3, 1, 0))
    r = jax.lax.conv_general_dilated(joi, wred, (1, 1), ((0, 0), (0, 0)),
                                     dimension_numbers=dn, precision=_HI)
    g = jnp.mean(r, axis=(1, 2))
    h = jnp.maximum(jnp.dot(g, params["fc1_w"].T, precision=_HI) + params["fc1_b"], 0.0)
    s = jax.nn.sigmoid(jnp.dot(h, params["fc2_w"].T, precision=_HI) + params["fc2_b"])
    out = r * s[:, None, None, :]
    return jnp.transpose(out, (0, 3, 1, 2))


def init_params(key, nIn, nOut, reduction):
    hidden = max(1, nOut // reduction)
    ks = jax.random.split(key, 8)
    sc = 0.2
    return dict(
        w1=jax.random.normal(ks[0], (nOut, nIn, 3, 3), jnp.float32) * sc,
        wloc=jax.random.normal(ks[1], (nOut, 1, 3, 3), jnp.float32) * sc,
        wsur=jax.random.normal(ks[2], (nOut, 1, 3, 3), jnp.float32) * sc,
        wred=jax.random.normal(ks[3], (nOut, 2 * nOut, 1, 1), jnp.float32) * sc,
        fc1_w=jax.random.normal(ks[4], (hidden, nOut), jnp.float32) * sc,
        fc1_b=jax.random.normal(ks[5], (hidden,), jnp.float32) * sc,
        fc2_w=jax.random.normal(ks[6], (nOut, hidden), jnp.float32) * sc,
        fc2_b=jax.random.normal(ks[7], (nOut,), jnp.float32) * sc,
    )


if __name__ == "__main__":
    N, nIn, H, W = 2, 4, 16, 16
    nOut, reduction, dilation_rate = 8, 4, 3

    key = jax.random.PRNGKey(0)
    kx, kp = jax.random.split(key)
    x = jax.random.normal(kx, (N, nIn, H, W), jnp.float32)
    params = init_params(kp, nIn, nOut, reduction)

    out = jax.block_until_ready(dsem_forward(x, params, dilation_rate))
    ref = jax.block_until_ready(dsem_reference(x, params, dilation_rate))
    # Kernel matmuls run on the MXU with bf16 operands + f32 accumulation and the
    # output is stored in bf16; the reference runs at HIGHEST precision in f32,
    # so allow a small relative/absolute tolerance.
    np.testing.assert_allclose(np.asarray(out), np.asarray(ref), rtol=2e-2, atol=2e-2)
    assert out.shape == (N, nOut, H // 2, W // 2)
    print("KERNEL_OK")
</pallas_src>

<mosaic_0001>
module attributes {stable_mosaic.version = 11 : i64} {
  func.func @dsem_kernel(%arg0: i32, %arg1: memref<1x64x36xbf16, #tpu.memory_space<vmem>>, %arg2: memref<36x128xbf16, #tpu.memory_space<vmem>>, %arg3: memref<9x128xf32, #tpu.memory_space<vmem>>, %arg4: memref<9x128xf32, #tpu.memory_space<vmem>>, %arg5: memref<128x128xbf16, #tpu.memory_space<vmem>>, %arg6: memref<128x128xbf16, #tpu.memory_space<vmem>>, %arg7: memref<8x128xf32, #tpu.memory_space<vmem>>, %arg8: memref<8x1xf32, #tpu.memory_space<vmem>>, %arg9: memref<8x128xf32, #tpu.memory_space<vmem>>, %arg10: memref<1x128xf32, #tpu.memory_space<vmem>>, %arg11: memref<1x64x128xbf16, #tpu.memory_space<vmem>>, %arg12: memref<14x19x128xf32, #tpu.memory_space<vmem>>) attributes {dimension_semantics = [#tpu.dimension_semantics<parallel>], iteration_bounds = array<i64: 2>, scalar_prefetch = 0 : i64, scratch_operands = 1 : i64, tpu.core_type = #tpu.core_type<tc>, window_params = [{transform_indices = @transform_0, window_bounds = array<i64: 1, 64, 36>}, {pipeline_mode = #tpu.pipeline_mode<synchronous>, transform_indices = @transform_1, window_bounds = array<i64: 36, 128>}, {pipeline_mode = #tpu.pipeline_mode<synchronous>, transform_indices = @transform_2, window_bounds = array<i64: 9, 128>}, {pipeline_mode = #tpu.pipeline_mode<synchronous>, transform_indices = @transform_3, window_bounds = array<i64: 9, 128>}, {pipeline_mode = #tpu.pipeline_mode<synchronous>, transform_indices = @transform_4, window_bounds = array<i64: 128, 128>}, {pipeline_mode = #tpu.pipeline_mode<synchronous>, transform_indices = @transform_5, window_bounds = array<i64: 128, 128>}, {pipeline_mode = #tpu.pipeline_mode<synchronous>, transform_indices = @transform_6, window_bounds = array<i64: 8, 128>}, {pipeline_mode = #tpu.pipeline_mode<synchronous>, transform_indices = @transform_7, window_bounds = array<i64: 8, 1>}, {pipeline_mode = #tpu.pipeline_mode<synchronous>, transform_indices = @transform_8, window_bounds = array<i64: 8, 128>}, {pipeline_mode = #tpu.pipeline_mode<synchronous>, transform_indices = @transform_9, window_bounds = array<i64: 1, 128>}, {transform_indices = @transform_10, window_bounds = array<i64: 1, 64, 128>}]} {
    %c0 = arith.constant 0 : index
    %c0_0 = arith.constant 0 : index
    %c0_1 = arith.constant 0 : index
    %0 = vector.load %arg1[%c0, %c0_0, %c0_1] : memref<1x64x36xbf16, #tpu.memory_space<vmem>>, vector<1x64x36xbf16>
    %1 = vector.shape_cast %0 : vector<1x64x36xbf16> to vector<64x36xbf16>
    %c0_2 = arith.constant 0 : index
    %c0_3 = arith.constant 0 : index
    %2 = vector.load %arg2[%c0_2, %c0_3] : memref<36x128xbf16, #tpu.memory_space<vmem>>, vector<36x128xbf16>
    %cst = arith.constant dense<0.000000e+00> : vector<64x128xf32>
    %3 = tpu.matmul %1, %2, %cst {dimension_numbers = #tpu.dot_dimension_numbers<[1], [0], [0], [1], [0, 0, 1, 1], [], []>} : vector<64x36xbf16>, vector<36x128xbf16>, vector<64x128xf32> -> vector<64x128xf32>
    %cst_4 = arith.constant dense<0.000000e+00> : vector<128xf32>
    %4 = vector.multi_reduction <add>, %3, %cst_4 [0] : vector<64x128xf32> to vector<128xf32>
    %5 = vector.shape_cast %4 : vector<128xf32> to vector<1x128xf32>
    %cst_5 = arith.constant 6.400000e+01 : f32
    %6 = vector.broadcast %cst_5 : f32 to vector<1x128xf32>
    %7 = arith.divf %5, %6 : vector<1x128xf32>
    %8 = vector.broadcast %7 : vector<1x128xf32> to vector<64x128xf32>
    %9 = arith.subf %3, %8 : vector<64x128xf32>
    %10 = arith.mulf %9, %9 : vector<64x128xf32>
    %cst_6 = arith.constant dense<0.000000e+00> : vector<128xf32>
    %11 = vector.multi_reduction <add>, %10, %cst_6 [0] : vector<64x128xf32> to vector<128xf32>
    %12 = vector.shape_cast %11 : vector<128xf32> to vector<1x128xf32>
    %cst_7 = arith.constant 6.400000e+01 : f32
    %13 = vector.broadcast %cst_7 : f32 to vector<1x128xf32>
    %14 = arith.divf %12, %13 : vector<1x128xf32>
    %cst_8 = arith.constant 9.99999974E-6 : f32
    %15 = vector.broadcast %cst_8 : f32 to vector<1x128xf32>
    %16 = arith.addf %14, %15 : vector<1x128xf32>
    %17 = math.rsqrt %16 : vector<1x128xf32>
    %18 = vector.broadcast %17 : vector<1x128xf32> to vector<64x128xf32>
    %19 = arith.mulf %9, %18 : vector<64x128xf32>
    %cst_9 = arith.constant 0.000000e+00 : f32
    %20 = vector.broadcast %cst_9 : f32 to vector<64x128xf32>
    %21 = arith.maximumf %19, %20 : vector<64x128xf32>
    %cst_10 = arith.constant 0.000000e+00 : f32
    %22 = vector.broadcast %cst_10 : f32 to vector<3x19x128xf32>
    %c0_11 = arith.constant 0 : index
    %c0_12 = arith.constant 0 : index
    %c0_13 = arith.constant 0 : index
    %23 = vector.load %arg12[%c0_11, %c0_12, %c0_13] : memref<14x19x128xf32, #tpu.memory_space<vmem>>, vector<3x19x128xf32>
    tpu.vector_store %arg12[%c0_11, %c0_12, %c0_13], %22 {strides = array<i32>} : memref<14x19x128xf32, #tpu.memory_space<vmem>>, vector<3x19x128xf32>,
    %cst_14 = arith.constant 0.000000e+00 : f32
    %24 = vector.broadcast %cst_14 : f32 to vector<3x19x128xf32>
    %c11 = arith.constant 11 : index
    %c0_15 = arith.constant 0 : index
    %c0_16 = arith.constant 0 : index
    %25 = vector.load %arg12[%c11, %c0_15, %c0_16] : memref<14x19x128xf32, #tpu.memory_space<vmem>>, vector<3x19x128xf32>
    tpu.vector_store %arg12[%c11, %c0_15, %c0_16], %24 {strides = array<i32>} : memref<14x19x128xf32, #tpu.memory_space<vmem>>, vector<3x19x128xf32>,
    %cst_17 = arith.constant 0.000000e+00 : f32
    %26 = vector.broadcast %cst_17 : f32 to vector<8x8x128xf32>
    %c3 = arith.constant 3 : index
    %c0_18 = arith.constant 0 : index
    %c0_19 = arith.constant 0 : index
    %27 = vector.load %arg12[%c3, %c0_18, %c0_19] : memref<14x19x128xf32, #tpu.memory_space<vmem>>, vector<8x8x128xf32>
    tpu.vector_store %arg12[%c3, %c0_18, %c0_19], %26 {strides = array<i32>} : memref<14x19x128xf32, #tpu.memory_space<vmem>>, vector<8x8x128xf32>,
    %cst_20 = arith.constant 0.000000e+00 : f32
    %28 = vector.broadcast %cst_20 : f32 to vector<8x3x128xf32>
    %c3_21 = arith.constant 3 : index
    %c16 = arith.constant 16 : index
    %c0_22 = arith.constant 0 : index
    %29 = vector.load %arg12[%c3_21, %c16, %c0_22] : memref<14x19x128xf32, #tpu.memory_space<vmem>>, vector<8x3x128xf32>
    tpu.vector_store %arg12[%c3_21, %c16, %c0_22], %28 {strides = array<i32>} : memref<14x19x128xf32, #tpu.memory_space<vmem>>, vector<8x3x128xf32>,
    %30 = vector.shape_cast %21 : vector<64x128xf32> to vector<8x8x128xf32>
    %c3_23 = arith.constant 3 : index
    %c8 = arith.constant 8 : index
    %c0_24 = arith.constant 0 : index
    %31 = vector.load %arg12[%c3_23, %c8, %c0_24] : memref<14x19x128xf32, #tpu.memory_space<vmem>>, vector<8x8x128xf32>
    tpu.vector_store %arg12[%c3_23, %c8, %c0_24], %30 {strides = array<i32>} : memref<14x19x128xf32, #tpu.memory_space<vmem>>, vector<8x8x128xf32>,
    %c2 = arith.constant 2 : index
    %c7 = arith.constant 7 : index
    %c0_25 = arith.constant 0 : index
    %32 = vector.load %arg12[%c2, %c7, %c0_25] : memref<14x19x128xf32, #tpu.memory_space<vmem>>, vector<10x8x128xf32>
    %33 = vector.extract_strided_slice %32 {offsets = [0, 0, 0], sizes = [8, 8, 128], strides = [1, 1, 1]} : vector<10x8x128xf32> to vector<8x8x128xf32>
    %c0_26 = arith.constant 0 : index
    %c0_27 = arith.constant 0 : index
    %34 = vector.load %arg3[%c0_26, %c0_27] : memref<9x128xf32, #tpu.memory_space<vmem>>, vector<1x128xf32>
    %35 = vector.shape_cast %34 : vector<1x128xf32> to vector<128xf32>
    %36 = vector.shape_cast %35 : vector<128xf32> to vector<1x1x128xf32>
    %37 = vector.broadcast %36 : vector<1x1x128xf32> to vector<8x8x128xf32>
    %38 = arith.mulf %33, %37 : vector<8x8x128xf32>
    %39 = vector.extract_strided_slice %32 {offsets = [1, 0, 0], sizes = [8, 8, 128], strides = [1, 1, 1]} : vector<10x8x128xf32> to vector<8x8x128xf32>
    %c3_28 = arith.constant 3 : index
    %c0_29 = arith.constant 0 : index
    %40 = vector.load %arg3[%c3_28, %c0_29] : memref<9x128xf32, #tpu.memory_space<vmem>>, vector<1x128xf32>
    %41 = vector.shape_cast %40 : vector<1x128xf32> to vector<128xf32>
    %42 = vector.shape_cast %41 : vector<128xf32> to vector<1x1x128xf32>
    %43 = vector.broadcast %42 : vector<1x1x128xf32> to vector<8x8x128xf32>
    %44 = arith.mulf %39, %43 : vector<8x8x128xf32>
    %45 = arith.addf %38, %44 : vector<8x8x128xf32>
    %46 = vector.extract_strided_slice %32 {offsets = [2, 0, 0], sizes = [8, 8, 128], strides = [1, 1, 1]} : vector<10x8x128xf32> to vector<8x8x128xf32>
    %c6 = arith.constant 6 : index
    %c0_30 = arith.constant 0 : index
    %47 = vector.load %arg3[%c6, %c0_30] : memref<9x128xf32, #tpu.memory_space<vmem>>, vector<1x128xf32>
    %48 = vector.shape_cast %47 : vector<1x128xf32> to vector<128xf32>
    %49 = vector.shape_cast %48 : vector<128xf32> to vector<1x1x128xf32>
    %50 = vector.broadcast %49 : vector<1x1x128xf32> to vector<8x8x128xf32>
    %51 = arith.mulf %46, %50 : vector<8x8x128xf32>
    %52 = arith.addf %45, %51 : vector<8x8x128xf32>
    %c2_31 = arith.constant 2 : index
    %c8_32 = arith.constant 8 : index
    %c0_33 = arith.constant 0 : index
    %53 = vector.load %arg12[%c2_31, %c8_32, %c0_33] : memref<14x19x128xf32, #tpu.memory_space<vmem>>, vector<10x8x128xf32>
    %54 = vector.extract_strided_slice %53 {offsets = [0, 0, 0], sizes = [8, 8, 128], strides = [1, 1, 1]} : vector<10x8x128xf32> to vector<8x8x128xf32>
    %c1 = arith.constant 1 : index
    %c0_34 = arith.constant 0 : index
    %55 = vector.load %arg3[%c1, %c0_34] : memref<9x128xf32, #tpu.memory_space<vmem>>, vector<1x128xf32>
    %56 = vector.shape_cast %55 : vector<1x128xf32> to vector<128xf32>
    %57 = vector.shape_cast %56 : vector<128xf32> to vector<1x1x128xf32>
    %58 = vector.broadcast %57 : vector<1x1x128xf32> to vector<8x8x128xf32>
    %59 = arith.mulf %54, %58 : vector<8x8x128xf32>
    %60 = arith.addf %52, %59 : vector<8x8x128xf32>
    %61 = vector.extract_strided_slice %53 {offsets = [1, 0, 0], sizes = [8, 8, 128], strides = [1, 1, 1]} : vector<10x8x128xf32> to vector<8x8x128xf32>
    %c4 = arith.constant 4 : index
    %c0_35 = arith.constant 0 : index
    %62 = vector.load %arg3[%c4, %c0_35] : memref<9x128xf32, #tpu.memory_space<vmem>>, vector<1x128xf32>
    %63 = vector.shape_cast %62 : vector<1x128xf32> to vector<128xf32>
    %64 = vector.shape_cast %63 : vector<128xf32> to vector<1x1x128xf32>
    %65 = vector.broadcast %64 : vector<1x1x128xf32> to vector<8x8x128xf32>
    %66 = arith.mulf %61, %65 : vector<8x8x128xf32>
    %67 = arith.addf %60, %66 : vector<8x8x128xf32>
    %68 = vector.extract_strided_slice %53 {offsets = [2, 0, 0], sizes = [8, 8, 128], strides = [1, 1, 1]} : vector<10x8x128xf32> to vector<8x8x128xf32>
    %c7_36 = arith.constant 7 : index
    %c0_37 = arith.constant 0 : index
    %69 = vector.load %arg3[%c7_36, %c0_37] : memref<9x128xf32, #tpu.memory_space<vmem>>, vector<1x128xf32>
    %70 = vector.shape_cast %69 : vector<1x128xf32> to vector<128xf32>
    %71 = vector.shape_cast %70 : vector<128xf32> to vector<1x1x128xf32>
    %72 = vector.broadcast %71 : vector<1x1x128xf32> to vector<8x8x128xf32>
    %73 = arith.mulf %68, %72 : vector<8x8x128xf32>
    %74 = arith.addf %67, %73 : vector<8x8x128xf32>
    %c2_38 = arith.constant 2 : index
    %c9 = arith.constant 9 : index
    %c0_39 = arith.constant 0 : index
    %75 = vector.load %arg12[%c2_38, %c9, %c0_39] : memref<14x19x128xf32, #tpu.memory_space<vmem>>, vector<10x8x128xf32>
    %76 = vector.extract_strided_slice %75 {offsets = [0, 0, 0], sizes = [8, 8, 128], strides = [1, 1, 1]} : vector<10x8x128xf32> to vector<8x8x128xf32>
    %c2_40 = arith.constant 2 : index
    %c0_41 = arith.constant 0 : index
    %77 = vector.load %arg3[%c2_40, %c0_41] : memref<9x128xf32, #tpu.memory_space<vmem>>, vector<1x128xf32>
    %78 = vector.shape_cast %77 : vector<1x128xf32> to vector<128xf32>
    %79 = vector.shape_cast %78 : vector<128xf32> to vector<1x1x128xf32>
    %80 = vector.broadcast %79 : vector<1x1x128xf32> to vector<8x8x128xf32>
    %81 = arith.mulf %76, %80 : vector<8x8x128xf32>
    %82 = arith.addf %74, %81 : vector<8x8x128xf32>
    %83 = vector.extract_strided_slice %75 {offsets = [1, 0, 0], sizes = [8, 8, 128], strides = [1, 1, 1]} : vector<10x8x128xf32> to vector<8x8x128xf32>
    %c5 = arith.constant 5 : index
    %c0_42 = arith.constant 0 : index
    %84 = vector.load %arg3[%c5, %c0_42] : memref<9x128xf32, #tpu.memory_space<vmem>>, vector<1x128xf32>
    %85 = vector.shape_cast %84 : vector<1x128xf32> to vector<128xf32>
    %86 = vector.shape_cast %85 : vector<128xf32> to vector<1x1x128xf32>
    %87 = vector.broadcast %86 : vector<1x1x128xf32> to vector<8x8x128xf32>
    %88 = arith.mulf %83, %87 : vector<8x8x128xf32>
    %89 = arith.addf %82, %88 : vector<8x8x128xf32>
    %90 = vector.extract_strided_slice %75 {offsets = [2, 0, 0], sizes = [8, 8, 128], strides = [1, 1, 1]} : vector<10x8x128xf32> to vector<8x8x128xf32>
    %c8_43 = arith.constant 8 : index
    %c0_44 = arith.constant 0 : index
    %91 = vector.load %arg3[%c8_43, %c0_44] : memref<9x128xf32, #tpu.memory_space<vmem>>, vector<1x128xf32>
    %92 = vector.shape_cast %91 : vector<1x128xf32> to vector<128xf32>
    %93 = vector.shape_cast %92 : vector<128xf32> to vector<1x1x128xf32>
    %94 = vector.broadcast %93 : vector<1x1x128xf32> to vector<8x8x128xf32>
    %95 = arith.mulf %90, %94 : vector<8x8x128xf32>
    %96 = arith.addf %89, %95 : vector<8x8x128xf32>
    %97 = vector.shape_cast %96 : vector<8x8x128xf32> to vector<64x128xf32>
    %cst_45 = arith.constant dense<0.000000e+00> : vector<128xf32>
    %98 = vector.multi_reduction <add>, %97, %cst_45 [0] : vector<64x128xf32> to vector<128xf32>
    %99 = vector.shape_cast %98 : vector<128xf32> to vector<1x128xf32>
    %cst_46 = arith.constant 6.400000e+01 : f32
    %100 = vector.broadcast %cst_46 : f32 to vector<1x128xf32>
    %101 = arith.divf %99, %100 : vector<1x128xf32>
    %102 = vector.broadcast %101 : vector<1x128xf32> to vector<64x128xf32>
    %103 = arith.subf %97, %102 : vector<64x128xf32>
    %104 = arith.mulf %103, %103 : vector<64x128xf32>
    %cst_47 = arith.constant dense<0.000000e+00> : vector<128xf32>
    %105 = vector.multi_reduction <add>, %104, %cst_47 [0] : vector<64x128xf32> to vector<128xf32>
    %106 = vector.shape_cast %105 : vector<128xf32> to vector<1x128xf32>
    %cst_48 = arith.constant 6.400000e+01 : f32
    %107 = vector.broadcast %cst_48 : f32 to vector<1x128xf32>
    %108 = arith.divf %106, %107 : vector<1x128xf32>
    %cst_49 = arith.constant 9.99999974E-6 : f32
    %109 = vector.broadcast %cst_49 : f32 to vector<1x128xf32>
    %110 = arith.addf %108, %109 : vector<1x128xf32>
    %111 = math.rsqrt %110 : vector<1x128xf32>
    %112 = vector.broadcast %111 : vector<1x128xf32> to vector<64x128xf32>
    %113 = arith.mulf %103, %112 : vector<64x128xf32>
    %cst_50 = arith.constant 0.000000e+00 : f32
    %114 = vector.broadcast %cst_50 : f32 to vector<64x128xf32>
    %115 = arith.maximumf %113, %114 : vector<64x128xf32>
    %c0_51 = arith.constant 0 : index
    %c5_52 = arith.constant 5 : index
    %c0_53 = arith.constant 0 : index
    %116 = vector.load %arg12[%c0_51, %c5_52, %c0_53] : memref<14x19x128xf32, #tpu.memory_space<vmem>>, vector<14x8x128xf32>
    %117 = vector.extract_strided_slice %116 {offsets = [0, 0, 0], sizes = [8, 8, 128], strides = [1, 1, 1]} : vector<14x8x128xf32> to vector<8x8x128xf32>
    %c0_54 = arith.constant 0 : index
    %c0_55 = arith.constant 0 : index
    %118 = vector.load %arg4[%c0_54, %c0_55] : memref<9x128xf32, #tpu.memory_space<vmem>>, vector<1x128xf32>
    %119 = vector.shape_cast %118 : vector<1x128xf32> to vector<128xf32>
    %120 = vector.shape_cast %119 : vector<128xf32> to vector<1x1x128xf32>
    %121 = vector.broadcast %120 : vector<1x1x128xf32> to vector<8x8x128xf32>
    %122 = arith.mulf %117, %121 : vector<8x8x128xf32>
    %123 = vector.extract_strided_slice %116 {offsets = [3, 0, 0], sizes = [8, 8, 128], strides = [1, 1, 1]} : vector<14x8x128xf32> to vector<8x8x128xf32>
    %c3_56 = arith.constant 3 : index
    %c0_57 = arith.constant 0 : index
    %124 = vector.load %arg4[%c3_56, %c0_57] : memref<9x128xf32, #tpu.memory_space<vmem>>, vector<1x128xf32>
    %125 = vector.shape_cast %124 : vector<1x128xf32> to vector<128xf32>
    %126 = vector.shape_cast %125 : vector<128xf32> to vector<1x1x128xf32>
    %127 = vector.broadcast %126 : vector<1x1x128xf32> to vector<8x8x128xf32>
    %128 = arith.mulf %123, %127 : vector<8x8x128xf32>
    %129 = arith.addf %122, %128 : vector<8x8x128xf32>
    %130 = vector.extract_strided_slice %116 {offsets = [6, 0, 0], sizes = [8, 8, 128], strides = [1, 1, 1]} : vector<14x8x128xf32> to vector<8x8x128xf32>
    %c6_58 = arith.constant 6 : index
    %c0_59 = arith.constant 0 : index
    %131 = vector.load %arg4[%c6_58, %c0_59] : memref<9x128xf32, #tpu.memory_space<vmem>>, vector<1x128xf32>
    %132 = vector.shape_cast %131 : vector<1x128xf32> to vector<128xf32>
    %133 = vector.shape_cast %132 : vector<128xf32> to vector<1x1x128xf32>
    %134 = vector.broadcast %133 : vector<1x1x128xf32> to vector<8x8x128xf32>
    %135 = arith.mulf %130, %134 : vector<8x8x128xf32>
    %136 = arith.addf %129, %135 : vector<8x8x128xf32>
    %c0_60 = arith.constant 0 : index
    %c8_61 = arith.constant 8 : index
    %c0_62 = arith.constant 0 : index
    %137 = vector.load %arg12[%c0_60, %c8_61, %c0_62] : memref<14x19x128xf32, #tpu.memory_space<vmem>>, vector<14x8x128xf32>
    %138 = vector.extract_strided_slice %137 {offsets = [0, 0, 0], sizes = [8, 8, 128], strides = [1, 1, 1]} : vector<14x8x128xf32> to vector<8x8x128xf32>
    %c1_63 = arith.constant 1 : index
    %c0_64 = arith.constant 0 : index
    %139 = vector.load %arg4[%c1_63, %c0_64] : memref<9x128xf32, #tpu.memory_space<vmem>>, vector<1x128xf32>
    %140 = vector.shape_cast %139 : vector<1x128xf32> to vector<128xf32>
    %141 = vector.shape_cast %140 : vector<128xf32> to vector<1x1x128xf32>
    %142 = vector.broadcast %141 : vector<1x1x128xf32> to vector<8x8x128xf32>
    %143 = arith.mulf %138, %142 : vector<8x8x128xf32>
    %144 = arith.addf %136, %143 : vector<8x8x128xf32>
    %145 = vector.extract_strided_slice %137 {offsets = [3, 0, 0], sizes = [8, 8, 128], strides = [1, 1, 1]} : vector<14x8x128xf32> to vector<8x8x128xf32>
    %c4_65 = arith.constant 4 : index
    %c0_66 = arith.constant 0 : index
    %146 = vector.load %arg4[%c4_65, %c0_66] : memref<9x128xf32, #tpu.memory_space<vmem>>, vector<1x128xf32>
    %147 = vector.shape_cast %146 : vector<1x128xf32> to vector<128xf32>
    %148 = vector.shape_cast %147 : vector<128xf32> to vector<1x1x128xf32>
    %149 = vector.broadcast %148 : vector<1x1x128xf32> to vector<8x8x128xf32>
    %150 = arith.mulf %145, %149 : vector<8x8x128xf32>
    %151 = arith.addf %144, %150 : vector<8x8x128xf32>
    %152 = vector.extract_strided_slice %137 {offsets = [6, 0, 0], sizes = [8, 8, 128], strides = [1, 1, 1]} : vector<14x8x128xf32> to vector<8x8x128xf32>
    %c7_67 = arith.constant 7 : index
    %c0_68 = arith.constant 0 : index
    %153 = vector.load %arg4[%c7_67, %c0_68] : memref<9x128xf32, #tpu.memory_space<vmem>>, vector<1x128xf32>
    %154 = vector.shape_cast %153 : vector<1x128xf32> to vector<128xf32>
    %155 = vector.shape_cast %154 : vector<128xf32> to vector<1x1x128xf32>
    %156 = vector.broadcast %155 : vector<1x1x128xf32> to vector<8x8x128xf32>
    %157 = arith.mulf %152, %156 : vector<8x8x128xf32>
    %158 = arith.addf %151, %157 : vector<8x8x128xf32>
    %c0_69 = arith.constant 0 : index
    %c11_70 = arith.constant 11 : index
    %c0_71 = arith.constant 0 : index
    %159 = vector.load %arg12[%c0_69, %c11_70, %c0_71] : memref<14x19x128xf32, #tpu.memory_space<vmem>>, vector<14x8x128xf32>
    %160 = vector.extract_strided_slice %159 {offsets = [0, 0, 0], sizes = [8, 8, 128], strides = [1, 1, 1]} : vector<14x8x128xf32> to vector<8x8x128xf32>
    %c2_72 = arith.constant 2 : index
    %c0_73 = arith.constant 0 : index
    %161 = vector.load %arg4[%c2_72, %c0_73] : memref<9x128xf32, #tpu.memory_space<vmem>>, vector<1x128xf32>
    %162 = vector.shape_cast %161 : vector<1x128xf32> to vector<128xf32>
    %163 = vector.shape_cast %162 : vector<128xf32> to vector<1x1x128xf32>
    %164 = vector.broadcast %163 : vector<1x1x128xf32> to vector<8x8x128xf32>
    %165 = arith.mulf %160, %164 : vector<8x8x128xf32>
    %166 = arith.addf %158, %165 : vector<8x8x128xf32>
    %167 = vector.extract_strided_slice %159 {offsets = [3, 0, 0], sizes = [8, 8, 128], strides = [1, 1, 1]} : vector<14x8x128xf32> to vector<8x8x128xf32>
    %c5_74 = arith.constant 5 : index
    %c0_75 = arith.constant 0 : index
    %168 = vector.load %arg4[%c5_74, %c0_75] : memref<9x128xf32, #tpu.memory_space<vmem>>, vector<1x128xf32>
    %169 = vector.shape_cast %168 : vector<1x128xf32> to vector<128xf32>
    %170 = vector.shape_cast %169 : vector<128xf32> to vector<1x1x128xf32>
    %171 = vector.broadcast %170 : vector<1x1x128xf32> to vector<8x8x128xf32>
    %172 = arith.mulf %167, %171 : vector<8x8x128xf32>
    %173 = arith.addf %166, %172 : vector<8x8x128xf32>
    %174 = vector.extract_strided_slice %159 {offsets = [6, 0, 0], sizes = [8, 8, 128], strides = [1, 1, 1]} : vector<14x8x128xf32> to vector<8x8x128xf32>
    %c8_76 = arith.constant 8 : index
    %c0_77 = arith.constant 0 : index
    %175 = vector.load %arg4[%c8_76, %c0_77] : memref<9x128xf32, #tpu.memory_space<vmem>>, vector<1x128xf32>
    %176 = vector.shape_cast %175 : vector<1x128xf32> to vector<128xf32>
    %177 = vector.shape_cast %176 : vector<128xf32> to vector<1x1x128xf32>
    %178 = vector.broadcast %177 : vector<1x1x128xf32> to vector<8x8x128xf32>
    %179 = arith.mulf %174, %178 : vector<8x8x128xf32>
    %180 = arith.addf %173, %179 : vector<8x8x128xf32>
    %181 = vector.shape_cast %180 : vector<8x8x128xf32> to vector<64x128xf32>
    %cst_78 = arith.constant dense<0.000000e+00> : vector<128xf32>
    %182 = vector.multi_reduction <add>, %181, %cst_78 [0] : vector<64x128xf32> to vector<128xf32>
    %183 = vector.shape_cast %182 : vector<128xf32> to vector<1x128xf32>
    %cst_79 = arith.constant 6.400000e+01 : f32
    %184 = vector.broadcast %cst_79 : f32 to vector<1x128xf32>
    %185 = arith.divf %183, %184 : vector<1x128xf32>
    %186 = vector.broadcast %185 : vector<1x128xf32> to vector<64x128xf32>
    %187 = arith.subf %181, %186 : vector<64x128xf32>
    %188 = arith.mulf %187, %187 : vector<64x128xf32>
    %cst_80 = arith.constant dense<0.000000e+00> : vector<128xf32>
    %189 = vector.multi_reduction <add>, %188, %cst_80 [0] : vector<64x128xf32> to vector<128xf32>
    %190 = vector.shape_cast %189 : vector<128xf32> to vector<1x128xf32>
    %cst_81 = arith.constant 6.400000e+01 : f32
    %191 = vector.broadcast %cst_81 : f32 to vector<1x128xf32>
    %192 = arith.divf %190, %191 : vector<1x128xf32>
    %cst_82 = arith.constant 9.99999974E-6 : f32
    %193 = vector.broadcast %cst_82 : f32 to vector<1x128xf32>
    %194 = arith.addf %192, %193 : vector<1x128xf32>
    %195 = math.rsqrt %194 : vector<1x128xf32>
    %196 = vector.broadcast %195 : vector<1x128xf32> to vector<64x128xf32>
    %197 = arith.mulf %187, %196 : vector<64x128xf32>
    %cst_83 = arith.constant 0.000000e+00 : f32
    %198 = vector.broadcast %cst_83 : f32 to vector<64x128xf32>
    %199 = arith.maximumf %197, %198 : vector<64x128xf32>
    %200 = arith.truncf %115 : vector<64x128xf32> to vector<64x128xbf16>
    %c0_84 = arith.constant 0 : index
    %c0_85 = arith.constant 0 : index
    %201 = vector.load %arg5[%c0_84, %c0_85] : memref<128x128xbf16, #tpu.memory_space<vmem>>, vector<128x128xbf16>
    %cst_86 = arith.constant dense<0.000000e+00> : vector<64x128xf32>
    %202 = tpu.matmul %200, %201, %cst_86 {dimension_numbers = #tpu.dot_dimension_numbers<[1], [0], [0], [1], [0, 0, 1, 1], [], []>} : vector<64x128xbf16>, vector<128x128xbf16>, vector<64x128xf32> -> vector<64x128xf32>
    %203 = arith.truncf %199 : vector<64x128xf32> to vector<64x128xbf16>
    %c0_87 = arith.constant 0 : index
    %c0_88 = arith.constant 0 : index
    %204 = vector.load %arg6[%c0_87, %c0_88] : memref<128x128xbf16, #tpu.memory_space<vmem>>, vector<128x128xbf16>
    %cst_89 = arith.constant dense<0.000000e+00> : vector<64x128xf32>
    %205 = tpu.matmul %203, %204, %cst_89 {dimension_numbers = #tpu.dot_dimension_numbers<[1], [0], [0], [1], [0, 0, 1, 1], [], []>} : vector<64x128xbf16>, vector<128x128xbf16>, vector<64x128xf32> -> vector<64x128xf32>
    %206 = arith.addf %202, %205 : vector<64x128xf32>
    %cst_90 = arith.constant dense<0.000000e+00> : vector<128xf32>
    %207 = vector.multi_reduction <add>, %206, %cst_90 [0] : vector<64x128xf32> to vector<128xf32>
    %208 = vector.shape_cast %207 : vector<128xf32> to vector<1x128xf32>
    %cst_91 = arith.constant 6.400000e+01 : f32
    %209 = vector.broadcast %cst_91 : f32 to vector<1x128xf32>
    %210 = arith.divf %208, %209 : vector<1x128xf32>
    %c0_92 = arith.constant 0 : index
    %c0_93 = arith.constant 0 : index
    %211 = vector.load %arg7[%c0_92, %c0_93] : memref<8x128xf32, #tpu.memory_space<vmem>>, vector<8x128xf32>
    %212 = vector.broadcast %210 : vector<1x128xf32> to vector<8x128xf32>
    %213 = arith.mulf %211, %212 : vector<8x128xf32>
    %cst_94 = arith.constant dense<0.000000e+00> : vector<8xf32>
    %214 = vector.multi_reduction <add>, %213, %cst_94 [1] : vector<8x128xf32> to vector<8xf32>
    %215 = vector.shape_cast %214 : vector<8xf32> to vector<8x1xf32>
    %c0_95 = arith.constant 0 : index
    %c0_96 = arith.constant 0 : index
    %216 = vector.load %arg8[%c0_95, %c0_96] : memref<8x1xf32, #tpu.memory_space<vmem>>, vector<8x1xf32>
    %217 = arith.addf %215, %216 : vector<8x1xf32>
    %cst_97 = arith.constant 0.000000e+00 : f32
    %218 = vector.broadcast %cst_97 : f32 to vector<8x1xf32>
    %219 = arith.maximumf %217, %218 : vector<8x1xf32>
    %c0_98 = arith.constant 0 : index
    %c0_99 = arith.constant 0 : index
    %220 = vector.load %arg9[%c0_98, %c0_99] : memref<8x128xf32, #tpu.memory_space<vmem>>, vector<8x128xf32>
    %221 = vector.broadcast %219 : vector<8x1xf32> to vector<8x128xf32>
    %222 = arith.mulf %220, %221 : vector<8x128xf32>
    %cst_100 = arith.constant dense<0.000000e+00> : vector<128xf32>
    %223 = vector.multi_reduction <add>, %222, %cst_100 [0] : vector<8x128xf32> to vector<128xf32>
    %224 = vector.shape_cast %223 : vector<128xf32> to vector<1x128xf32>
    %c0_101 = arith.constant 0 : index
    %c0_102 = arith.constant 0 : index
    %225 = vector.load %arg10[%c0_101, %c0_102] : memref<1x128xf32, #tpu.memory_space<vmem>>, vector<1x128xf32>
    %226 = arith.addf %224, %225 : vector<1x128xf32>
    %227 = arith.negf %226 : vector<1x128xf32>
    %228 = math.exp %227 : vector<1x128xf32>
    %cst_103 = arith.constant 1.000000e+00 : f32
    %229 = vector.broadcast %cst_103 : f32 to vector<1x128xf32>
    %230 = arith.addf %229, %228 : vector<1x128xf32>
    %231 = arith.divf %229, %230 : vector<1x128xf32>
    %232 = vector.broadcast %231 : vector<1x128xf32> to vector<64x128xf32>
    %233 = arith.mulf %206, %232 : vector<64x128xf32>
    %234 = arith.truncf %233 : vector<64x128xf32> to vector<64x128xbf16>
    %c0_104 = arith.constant 0 : index
    %c0_105 = arith.constant 0 : index
    %c0_106 = arith.constant 0 : index
    %235 = vector.load %arg11[%c0_104, %c0_105, %c0_106] : memref<1x64x128xbf16, #tpu.memory_space<vmem>>, vector<1x64x128xbf16>
    %236 = vector.shape_cast %235 : vector<1x64x128xbf16> to vector<64x128xbf16>
    %237 = vector.shape_cast %234 : vector<64x128xbf16> to vector<1x64x128xbf16>
    tpu.vector_store %arg11[%c0_104, %c0_105, %c0_106], %237 {strides = array<i32>} : memref<1x64x128xbf16, #tpu.memory_space<vmem>>, vector<1x64x128xbf16>,
    return
  }
  func.func @transform_0(%arg0: i32) -> (i32, i32, i32) {
    %c0_i32 = arith.constant 0 : i32
    %c0_i32_0 = arith.constant 0 : i32
    %c0_i32_1 = arith.constant 0 : i32
    return %arg0, %c0_i32, %c0_i32_0 : i32, i32, i32
  }
  func.func @transform_1(%arg0: i32) -> (i32, i32) {
    %c0_i32 = arith.constant 0 : i32
    %c0_i32_0 = arith.constant 0 : i32
    %c0_i32_1 = arith.constant 0 : i32
    return %c0_i32, %c0_i32_0 : i32, i32
  }
  func.func @transform_2(%arg0: i32) -> (i32, i32) {
    %c0_i32 = arith.constant 0 : i32
    %c0_i32_0 = arith.constant 0 : i32
    %c0_i32_1 = arith.constant 0 : i32
    return %c0_i32, %c0_i32_0 : i32, i32
  }
  func.func @transform_3(%arg0: i32) -> (i32, i32) {
    %c0_i32 = arith.constant 0 : i32
    %c0_i32_0 = arith.constant 0 : i32
    %c0_i32_1 = arith.constant 0 : i32
    return %c0_i32, %c0_i32_0 : i32, i32
  }
  func.func @transform_4(%arg0: i32) -> (i32, i32) {
    %c0_i32 = arith.constant 0 : i32
    %c0_i32_0 = arith.constant 0 : i32
    %c0_i32_1 = arith.constant 0 : i32
    return %c0_i32, %c0_i32_0 : i32, i32
  }
  func.func @transform_5(%arg0: i32) -> (i32, i32) {
    %c0_i32 = arith.constant 0 : i32
    %c0_i32_0 = arith.constant 0 : i32
    %c0_i32_1 = arith.constant 0 : i32
    return %c0_i32, %c0_i32_0 : i32, i32
  }
  func.func @transform_6(%arg0: i32) -> (i32, i32) {
    %c0_i32 = arith.constant 0 : i32
    %c0_i32_0 = arith.constant 0 : i32
    %c0_i32_1 = arith.constant 0 : i32
    return %c0_i32, %c0_i32_0 : i32, i32
  }
  func.func @transform_7(%arg0: i32) -> (i32, i32) {
    %c0_i32 = arith.constant 0 : i32
    %c0_i32_0 = arith.constant 0 : i32
    %c0_i32_1 = arith.constant 0 : i32
    return %c0_i32, %c0_i32_0 : i32, i32
  }
  func.func @transform_8(%arg0: i32) -> (i32, i32) {
    %c0_i32 = arith.constant 0 : i32
    %c0_i32_0 = arith.constant 0 : i32
    %c0_i32_1 = arith.constant 0 : i32
    return %c0_i32, %c0_i32_0 : i32, i32
  }
  func.func @transform_9(%arg0: i32) -> (i32, i32) {
    %c0_i32 = arith.constant 0 : i32
    %c0_i32_0 = arith.constant 0 : i32
    %c0_i32_1 = arith.constant 0 : i32
    return %c0_i32, %c0_i32_0 : i32, i32
  }
  func.func @transform_10(%arg0: i32) -> (i32, i32, i32) {
    %c0_i32 = arith.constant 0 : i32
    %c0_i32_0 = arith.constant 0 : i32
    %c0_i32_1 = arith.constant 0 : i32
    return %arg0, %c0_i32, %c0_i32_0 : i32, i32, i32
  }
}

</mosaic_0001>

<bundles_post_ra>
// kernel: tpu_custom_call.1
= control target key start
LH: loop header
LB: loop body
LE: loop exit
PB: predicated region body
PF: predicated region fallthrough
CT: control target
= control target key end

     0   :  { %15 = vsyncpa [#allocation4], 0  ;;  %s2731_s0 = inlined_call_operand.vmem [shape: bf16[2,64,36], index: 0, kind: input, shape index: {}]   ;;  %s2732_s1 = inlined_call_operand.vmem [shape: bf16[36,128], index: 1, kind: input, shape index: {}]   ;;  %s2733_s2 = inlined_call_operand.vmem [shape: f32[9,128], index: 2, kind: input, shape index: {}]   ;;  %s2734_s3 = inlined_call_operand.vmem [shape: f32[9,128], index: 3, kind: input, shape index: {}]   ;;  %s2735_s4 = inlined_call_operand.vmem [shape: bf16[128,128], index: 4, kind: input, shape index: {}]   ;;  %s2736_s5 = inlined_call_operand.hbm [shape: bf16[128,128], index: 5, kind: input, shape index: {}]   ;;  %s2737_s6 = inlined_call_operand.vmem [shape: f32[8,128], index: 6, kind: input, shape index: {}]   ;;  %s2738_s7 = inlined_call_operand.vmem [shape: f32[8,1], index: 7, kind: input, shape index: {}]   ;;  %s2739_s8 = inlined_call_operand.vmem [shape: f32[8,128], index: 8, kind: input, shape index: {}]   ;;  %s2740_s9 = inlined_call_operand.vmem [shape: f32[1,128], index: 9, kind: input, shape index: {}]   ;;  %s2741_s10 = inlined_call_operand.hbm [shape: bf16[2,64,128], index: 10, kind: output, shape index: {}]  }
   0x1   :  { %16 = vsyncpa [#allocation5], 0 }
   0x2   :  { %18 = vsyncpa [#allocation5 + $0x1], 0  ;;  %s2070_s13 = smov 0   ;;  %s2072_s14 = smov 0  }
   0x3   :  { %s2074_s15 = smov 0   ;;  %s2076_s16 = smov 0  }
   0x4 LB: > { %s2091_s17 = sadd.s32 4294967295, %s2005_s16   ;;  %s1618_s18 = sadd.s32 4294967294, %s2005_s16   ;;  %s2005_s16 = sphi %s2076_s16, %s2828_s16   ;;  %s2001_s15 = sphi %s2074_s15, %s2827_s15   ;;  %s1997_s14 = sphi %s2072_s14, %s2826_s14   ;;  %s1993_s13 = sphi %s2070_s13, %s2825_s13  }
   0x5   : > { %s2095_s19 = sadd.s32 1, %s2005_s16   ;;  %s246_s20 = sadd.s32 1, %s2001_s15 }
   0x6   : > { %s243_s21 = ssub.s32 %s2005_s16, %s2095_s19  ;;  %p256_p0 = scmp.ne.s32.totalorder %s2001_s15, %s1997_s14 }
   0x7   : > { %p244_p1 = scmp.eq.s32.totalorder %s243_s21, 0  ;;  %p257_p2 = scmp.eq.s32.totalorder %s2091_s17, 1 }
   0x8   : > { %p262_p3 = scmp.ne.s32.totalorder %s1997_s14, %s1993_s13  ;;  %p263_p4 = scmp.eq.s32.totalorder %s1618_s18, 1 }
   0x9   : > { %s2106_s22 = scalar_select %p244_p1, %s2001_s15, %s246_s20  }
   0xa   : > { %p2108_p5 = por %p257_p2, %p256_p0  ;;  %p2112_p6 = por %p263_p4, %p262_p3 }
   0xb   : > { %p1619_p7 = scmp.ge.s32.totalorder %s2005_s16, 1  ;;  %p270_p8 = scmp.lt.s32.totalorder %s2005_s16, 3 }
   0xc   : > { %s2758_s23 = scalar_select %p2108_p5, 1, 0 }
   0xd   : > { %s2759_s24 = scalar_select %p2112_p6, 1, 0 }
   0xe   : > { %p2742_p9 = scmp.eq.s32.totalorder %s2091_s17, 0  ;;  %p2119_p10 = pnand %p1619_p7, %p270_p8 }
   0xf   : > { %s2007_s26 = smov [#allocation3]   ;;  %s1911_s11 = scalar_lea.hbm %s2736_s5, 1024 }
  0x10   : > { %s2760_s25 = scalar_select %p2119_p10, 1, 0 }
  0x11   : > { %s294_s27 = sshll.u32 %s2007_s26, 4  ;;  %p1827_p11 = pneg %p2119_p10  ;;  %s295_s27 = int_to_ptr.vmem [resolvable:$true] %s294_s27 }
  0x12   : > { %p1912_p13 = scmp.ne.s32.totalorder %s2736_s5, %s1911_s11  ;;  %p1918_p3 = scmp.lt.u32.totalorder %s1911_s11, %s2736_s5 }
  0x13   : > { %p2127_p12 = pnand %p2742_p9, %p1827_p11 }
  0x15   : > { %p1913_p0 = pneg %p2127_p12 }
  0x17   : > { %p1914_p1 = pnand %p1913_p0, %p1912_p13 }
  0x19   : > { %p1915_p2 = pneg %p1914_p1 }
  0x1b   : > { %p1920_p4 = pnand %p1918_p3, %p1915_p2 }
  0x1d   : > { %1923 = shalt.err (!%p1920_p4)
}
  0x1e   : > { %s1924_s26 = scalar_lea.vmem %s295_s27, 1024  ;;  %p1932_p9 = scmp.lt.s32.totalorder %s295_s27, %s295_s27 }
  0x1f   : > { %p1925_p7 = scmp.ne.s32.totalorder %s295_s27, %s1924_s26  ;;  %p1933_p6 = scmp.lt.s32.totalorder %s1924_s26, %s1924_s26 }
  0x21   : > { %p1927_p8 = pnand %p1925_p7, %p1913_p0  ;;  %p1934_p5 = por %p1933_p6, %p1932_p9 }
  0x23   : > { %p1928_p11 = pneg %p1927_p8 }
  0x25   : > { %p1935_p10 = pnand %p1934_p5, %p1928_p11 }
  0x27   : > { %1938 = shalt.err (!%p1935_p10)
}
  0x28   : > { %s2008_s29 = smov 64   ;;  %s2009_s30 = smov 4  }
  0x29   : > { %1830 = dma.hbm_to_vmem [thread:$0]  (!%p2127_p12), %s2736_s5, 1024, %s295_s27, [#allocation4], %s2008_s29, %s2008_s29, %s2009_s30  }
  0x2a   : > { %p2762_p13 = scmp.ne.s32.totalorder %s2760_s25, 0 }
  0x2c   : > { %330 = sbr.rel (%p2762_p13) target bundleno = 1097 (0x449), region = 60 }
  0x33   : > { %p2763_p1 = scmp.eq.s32.totalorder %s2091_s17, 0 }
  0x35   : > { %1984 = dma.done.wait (%p2763_p1), [#allocation4], 1024   ;;  %p2764_p0 = pmov %p2763_p1 }
  0x36   : > { %p368_p5 = scmp.lt.s32.totalorder %s2091_s17, 1  ;;  %v1878_v0 = vld [vmem:[%s2732_s1] sm:$0xff]   ;;  %vm435_vm0 = vcmask 1041408   ;;  %v1879_v1 = vld [vmem:[%s2732_s1 + $0x8] sm:$0xff]   ;;  %vm422_vm1 = vcmask 293888   ;;  %v1885_v8 = vld [vmem:[#allocation3] sm:$0xff]  }
  0x37   : > { %1986 = vsyncadd (%p2764_p0), [#allocation4], 4294966272  ;;  %1750 = vmatprep.subr.bf16.mxu0 %v1878_v0  ;;  %v1880_v2 = vld [vmem:[%s2732_s1 + $0x10] ss:$0 sps:$4 sm:$0x33]   ;;  %v1886_v9 = vld [vmem:[%s2735_s4] sm:$0xff]  }
  0x38   : > { %s369_s11 = scalar_select %p368_p5, %s2091_s17, 1  ;;  %1751 = vmatpush3.bf16.msra.mxu0 %v1878_v0  ;;  %v437_v4 = vsel %vm435_vm0, %v1880_v2, 0  ;;  %v1887_v10 = vld [vmem:[#allocation3 + $0x8] sm:$0xff]   ;;  %v2010_v11 = vmov 0.0   ;;  %v1888_v12 = vld [vmem:[%s2735_s4 + $0x8] sm:$0xff]   ;;  %1788 = vmatprep.subr.bf16.mxu1 %v1886_v9  ;;  %v1889_v13 = vld [vmem:[#allocation3 + $0x10] sm:$0xff]  }
  0x39   : > { %1752 = vmatprep.subr.bf16.mxu0 %v1879_v1  ;;  %567 = vst [vmem:[#allocation2] sm:$0xff] %v2010_v11  ;;  %568 = vst [vmem:[#allocation2 + $0x8] sm:$0xff] %v2010_v11  ;;  %1789 = vmatpush3.bf16.msra.mxu1 %v1886_v9  ;;  %v1890_v14 = vld [vmem:[%s2735_s4 + $0x10] sm:$0xff]   ;;  %v1891_v15 = vld [vmem:[#allocation3 + $0x18] sm:$0xff]   ;;  %s365_s12 = sand.u32 1, %s1997_s14   ;;  %s1695_s25 = sshll.u32 %s2091_s17, 9 }
  0x3a   : > { %s1686_s20 = sshll.u32 %s369_s11, 5  ;;  %569 = vst [vmem:[#allocation2 + $0x10] sm:$0x7] %v2010_v11  ;;  %570 = vst [vmem:[#allocation2 + $0x18] sm:$0xff] %v2010_v11  ;;  %1790 = vmatprep.subr.bf16.mxu1 %v1888_v12  ;;  %v1892_v16 = vld [vmem:[%s2735_s4 + $0x18] sm:$0xff]   ;;  %v1893_v17 = vld [vmem:[#allocation3 + $0x20] sm:$0xff]   ;;  %s2686_s17 = scalar_lea.hbm %s2741_s10, %s1695_s25 }
  0x3b   : > { %s372_s26 = scalar_lea.vmem %s2731_s0, %s1686_s20  ;;  %571 = vst [vmem:[#allocation2 + $0x20] sm:$0xff] %v2010_v11  ;;  %572 = vst [vmem:[#allocation2 + $0x28] sm:$0x7] %v2010_v11  ;;  %v1894_v18 = vld [vmem:[%s2735_s4 + $0x20] sm:$0xff]   ;;  %v1895_v19 = vld [vmem:[#allocation3 + $0x28] sm:$0xff]   ;;  %s1624_s27 = sshll.u32 %s365_s12, 5 }
  0x3c   : > { %v1881_v3 = vld [vmem:[%s372_s26] sm:$0xff]   ;;  %1753 = vmatpush3.bf16.msra.mxu0 %v1879_v1  ;;  %v1882_v5 = vld [vmem:[%s372_s26 + $0x8] sm:$0xff]   ;;  %v1883_v6 = vld [vmem:[%s372_s26 + $0x10] sm:$0xff]   ;;  %573 = vst [vmem:[#allocation2 + $0x30] sm:$0xff] %v2010_v11  ;;  %s367_s29 = scalar_lea.vmem [#allocation6], %s1624_s27  ;;  %s2690_s20 = scalar_lea.sflag [#allocation5], %s365_s12 }
  0x3d   : > { %1756 = vmatprep.mubr.msk.bf16.mxu0 %vm422_vm1, %v1881_v3  ;;  %1820 = vmatprep.subr.msk.bf16.mxu0 %vm435_vm0, %v1880_v2  ;;  %v1884_v7 = vld [vmem:[%s372_s26 + $0x18] sm:$0xff]   ;;  %574 = vst [vmem:[#allocation2 + $0x38] sm:$0xff] %v2010_v11  ;;  %575 = vst [vmem:[#allocation2 + $0x40] sm:$0x7] %v2010_v11  ;;  %v1896_v20 = vld [vmem:[%s2735_s4 + $0x28] sm:$0xff]   ;;  %s1544_s30 = sshll.u32 %s367_s29, 4  ;;  %s2688_s30 = int_to_ptr.vmem [resolvable:$true] %s1544_s30 }
  0x3e   : > { %577 = vst [vmem:[#allocation2 + $0x108] sm:$0xff] %v2010_v11  ;;  %578 = vst [vmem:[#allocation2 + $0x110] sm:$0xff] %v2010_v11  ;;  %1791 = vmatpush3.bf16.msra.mxu1 %v1888_v12  ;;  %v1897_v21 = vld [vmem:[#allocation3 + $0x30] sm:$0xff]   ;;  %v1898_v22 = vld [vmem:[%s2735_s4 + $0x30] sm:$0xff]   ;;  %s1939_s21 = scalar_lea.vmem %s2688_s30, 512  ;;  %p2823_p9 = scmp.ne.s32.totalorder %s2758_s23, 0 }
  0x3f   : > { %579 = vst [vmem:[#allocation2 + $0x118] sm:$0x7] %v2010_v11  ;;  %580 = vst [vmem:[#allocation2 + $0x120] sm:$0xff] %v2010_v11  ;;  %1792 = vmatprep.subr.bf16.mxu1 %v1890_v14  ;;  %v1899_v23 = vld [vmem:[#allocation3 + $0x38] sm:$0xff]   ;;  %v1900_v24 = vld [vmem:[%s2735_s4 + $0x38] sm:$0xff]   ;;  %p1940_p6 = scmp.ne.s32.totalorder %s2688_s30, %s1939_s21  ;;  %s2012_s28 = smov [#allocation6]  }
  0x40   : > { %1755 = vmatpush3.bf16.msra.mxu0 %v437_v4  ;;  %581 = vst [vmem:[#allocation2 + $0x128] sm:$0xff] %v2010_v11  ;;  %582 = vst [vmem:[#allocation2 + $0x130] sm:$0x7] %v2010_v11  ;;  %s1943_s26 = sshll.u32 %s2012_s28, 4  ;;  %s1944_s26 = int_to_ptr.vmem [resolvable:$false] %s1943_s26 }
  0x41   : > { %583 = vst [vmem:[#allocation2 + $0x138] sm:$0xff] %v2010_v11  ;;  %584 = vst [vmem:[#allocation2 + $0x140] sm:$0xff] %v2010_v11  ;;  %1764 = vmatprep.subr.bf16.mxu0 %v1885_v8  ;;  %p1941_p10 = pnand %p1940_p6, %p2823_p9  ;;  %s1945_s27 = scalar_lea.vmem %s1944_s26, 1024 }
  0x42   : > { %585 = vst [vmem:[#allocation2 + $0x148] sm:$0x7] %v2010_v11  ;;  %587 = vst [vmem:[#allocation2 + $0x48] sm:$0xff] %v2010_v11  ;;  %1793 = vmatpush3.bf16.msra.mxu1 %v1890_v14  ;;  %v885_v14 = vld [vmem:[#allocation2 + $0x5] sm:$0xff]  ;;  %p1946_p2 = scmp.lt.s32.totalorder %s2688_s30, %s1944_s26  ;;  %p1947_p3 = scmp.lt.s32.totalorder %s1945_s27, %s1939_s21 }
  0x43   : > { %1757 = vmatmul.mubr.msk.bf16.vlgmr.msra.gmra.mrb[0].mxu0 %vm422_vm1, %v1882_v5  ;;  %588 = vst [vmem:[#allocation2 + $0x60] sm:$0xff] %v2010_v11  ;;  %589 = vst [vmem:[#allocation2 + $0x78] sm:$0xff] %v2010_v11  ;;  %1794 = vmatprep.subr.bf16.mxu1 %v1892_v16  ;;  %p1942_p12 = pneg %p1941_p10 }
  0x44   : > { %1760 = vmatprep.mubr.msk.bf16.mxu0 %vm422_vm1, %v1883_v6  ;;  %590 = vst [vmem:[#allocation2 + $0x90] sm:$0xff] %v2010_v11  ;;  %591 = vst [vmem:[#allocation2 + $0xa8] sm:$0xff] %v2010_v11  ;;  %1765 = vmatpush3.bf16.msra.mxu0 %v1885_v8  ;;  %p1948_p4 = por %p1947_p3, %p1946_p2 }
  0x45   : > { %592 = vst [vmem:[#allocation2 + $0xc0] sm:$0xff] %v2010_v11  ;;  %593 = vst [vmem:[#allocation2 + $0xd8] sm:$0xff] %v2010_v11  ;;  %1766 = vmatprep.subr.bf16.mxu0 %v1887_v10 }
  0x46   : > { %594 = vst [vmem:[#allocation2 + $0xf0] sm:$0xff] %v2010_v11  ;;  %595 = vst [vmem:[#allocation2 + $0x58] sm:$0x7] %v2010_v11  ;;  %1795 = vmatpush3.bf16.msra.mxu1 %v1892_v16  ;;  %v887_v16 = vld [vmem:[#allocation2 + $0x35] sm:$0xff]  ;;  %p1949_p7 = pnand %p1948_p4, %p1942_p12 }
  0x47   : > { %596 = vst [vmem:[#allocation2 + $0x70] sm:$0x7] %v2010_v11  ;;  %597 = vst [vmem:[#allocation2 + $0x88] sm:$0x7] %v2010_v11  ;;  %1796 = vmatprep.subr.bf16.mxu1 %v1894_v18 }
  0x48   : > { %598 = vst [vmem:[#allocation2 + $0xa0] sm:$0x7] %v2010_v11  ;;  %599 = vst [vmem:[#allocation2 + $0xb8] sm:$0x7] %v2010_v11  ;;  %1767 = vmatpush3.bf16.msra.mxu0 %v1887_v10 }
  0x49   : > { %600 = vst [vmem:[#allocation2 + $0xd0] sm:$0x7] %v2010_v11  ;;  %601 = vst [vmem:[#allocation2 + $0xe8] sm:$0x7] %v2010_v11  ;;  %1768 = vmatprep.subr.bf16.mxu0 %v1889_v13 }
  0x4a   : > { %602 = vst [vmem:[#allocation2 + $0x100] sm:$0x7] %v2010_v11  ;;  %1797 = vmatpush3.bf16.msra.mxu1 %v1894_v18  ;;  %v2230_v18 = vld [vmem:[%s2734_s3] ss:$0 sm:$0xff] }
  0x4b   : > { %1761 = vmatmul.mubr.msk.bf16.gmra.mrb[4].mxu0 %vm422_vm1, %v1884_v7  ;;  %1798 = vmatprep.subr.bf16.mxu1 %v1896_v20 }
  0x4c   : > { %1769 = vmatpush3.bf16.msra.mxu0 %v1889_v13 }
  0x4d   : > { %1770 = vmatprep.subr.bf16.mxu0 %v1891_v15 }
  0x4e   : > { %1799 = vmatpush3.bf16.msra.mxu1 %v1896_v20  ;;  %v898_v20 = vld [vmem:[#allocation2 + $0x13d] sm:$0xff] }
  0x4f   : > { %1800 = vmatprep.subr.bf16.mxu1 %v1898_v22 }
  0x50   : > { %1771 = vmatpush3.bf16.msra.mxu0 %v1891_v15  ;;  %v886_v15 = vld [vmem:[#allocation2 + $0x1d] sm:$0xff] }
  0x51   : > { %1772 = vmatprep.subr.bf16.mxu0 %v1893_v17 }
  0x52   : > { %1801 = vmatpush3.bf16.msra.mxu1 %v1898_v22  ;;  %v1650_v22 = vld [vmem:[%s2734_s3 + $0x1] ss:$0 sm:$0xff] }
  0x53   : > { %1802 = vmatprep.subr.bf16.mxu1 %v1900_v24 }
  0x54   : > { %1773 = vmatpush3.bf16.msra.mxu0 %v1893_v17  ;;  %v896_v17 = vld [vmem:[#allocation2 + $0x10d] sm:$0xff] }
  0x55   : > { %1774 = vmatprep.subr.bf16.mxu0 %v1895_v19 }
  0x56   : > { %1803 = vmatpush3.bf16.msra.mxu1 %v1900_v24  ;;  %v1031_v24 = vld [vmem:[#allocation2 + $0xb] sm:$0xff] }
  0x58   : > { %1775 = vmatpush3.bf16.msra.mxu0 %v1895_v19  ;;  %v897_v19 = vld [vmem:[#allocation2 + $0x125] sm:$0xff] }
  0x59   : > { %1776 = vmatprep.subr.bf16.mxu0 %v1897_v21 }
  0x5c   : > { %1777 = vmatpush3.bf16.msra.mxu0 %v1897_v21  ;;  %v2235_v21 = vld [vmem:[%s2734_s3 + $0x6] ss:$0 sm:$0xff] }
  0x5d   : > { %1778 = vmatprep.subr.bf16.mxu0 %v1899_v23 }
  0x60   : > { %1779 = vmatpush3.bf16.msra.mxu0 %v1899_v23  ;;  %v2243_v23 = vld [vmem:[%s2734_s3 + $0x7] ss:$0 sm:$0xff] }
 0x116   : > { %v1758_v25 = vpop.f32.mrb[0].mxu0 }
 0x117   : > { %v473_v26 = vpop.f32.mrb[1].mxu0 }
 0x118   : > { %v1759_v27 = vpop.f32.mrb[2].mxu0 }
 0x119   : > { %v476_v28 = vpop.f32.mrb[3].mxu0 }
 0x11a   : > { %v504_v29 = vadd.f32 %v476_v28, %v473_v26 }
 0x11c   : > { %v505_v30 = vadd.f32 %v1758_v25, %v504_v29  ;;  %v1042_v29 = vld [vmem:[#allocation2 + $0x113] sm:$0xff] }
 0x11e   : > { %v1762_v31 = vpop.f32.mrb[4].mxu0  ;;  %v506_v32 = vadd.f32 %v1759_v27, %v505_v30  ;;  %v1043_v30 = vld [vmem:[#allocation2 + $0x12b] sm:$0xff] }
 0x11f   : > { %v489_v33 = vpop.f32.mrb[5].mxu0 }
 0x120   : > { %v507_v34 = vadd.f32 %v506_v32, %v489_v33  ;;  %v1763_v35 = vpop.f32.mrb[6].mxu0  ;;  %v2254_v32 = vmul.f32 %v2230_v18, %v886_v15 }
 0x121   : > { %v492_v36 = vpop.f32.mrb[7].mxu0 }
 0x122   : > { %v508_v37 = vadd.f32 %v507_v34, %v492_v36  ;;  %v2260_v34 = vmul.f32 %v2235_v21, %v896_v17 }
 0x124   : > { %v509_v38 = vadd.f32 %v1762_v31, %v508_v37  ;;  %v621_v37 = vld [vmem:[#allocation2 + $0x10f] sm:$0xff] }
 0x126   : > { %v510_v39 = vadd.f32 %v1763_v35, %v509_v38  ;;  %v2268_v38 = vld [vmem:[%s2733_s2] ss:$0 sm:$0xff] }
 0x127   : > { %2765 = vst [vmem:[#allocation9_spill] sm:$0xff] %v2268_v38 }
 0x128   : > { %v511_v40 = vrot.slane %v510_v39, 4 }
 0x12a   : > { %v512_v41 = vadd.f32 %v511_v40, %v510_v39  ;;  %v2271_v39 = vmul.f32 %v2235_v21, %v898_v20  ;;  %v2273_v40 = vmul.f32 0.0, %v1650_v22 }
 0x12c   : > { %v513_v42 = vrot.slane %v512_v41, 2 }
 0x12e   : > { %v514_v43 = vadd.f32 %v513_v42, %v512_v41  ;;  %v2276_v41 = vmul.f32 0.0, %v2243_v23 }
 0x130   : > { %v515_v44 = vrot.slane %v514_v43, 1 }
 0x132   : > { %v516_v45 = vadd.f32 %v515_v44, %v514_v43  ;;  %v2284_v43 = vld [vmem:[%s2734_s3 + $0x8] ss:$0 sm:$0xff] }
 0x134   : > { %v518_v46 = vmul.f32 0.015625, %v516_v45 }
 0x136   : > { %v2195_v47 = vsub.f32 %v473_v26, %v518_v46  ;;  %v2197_v48 = vsub.f32 %v476_v28, %v518_v46  ;;  %v2199_v49 = vsub.f32 %v1758_v25, %v518_v46  ;;  %v2201_v50 = vsub.f32 %v1759_v27, %v518_v46  ;;  %v1032_v25 = vld [vmem:[#allocation2 + $0x23] sm:$0xff]  ;;  %v1033_v26 = vld [vmem:[#allocation2 + $0x3b] sm:$0xff] }
 0x137   : > { %v2203_v51 = vsub.f32 %v489_v33, %v518_v46  ;;  %v2205_v52 = vsub.f32 %v492_v36, %v518_v46  ;;  %v2207_v53 = vsub.f32 %v1762_v31, %v518_v46  ;;  %v2209_v54 = vsub.f32 %v1763_v35, %v518_v46  ;;  %v2248_v27 = vld [vmem:[%s2734_s3 + $0x2] ss:$0 sm:$0xff]  ;;  %v1044_v31 = vld [vmem:[#allocation2 + $0x143] sm:$0xff]  ;;  %v612_v36 = vld [vmem:[#allocation2 + $0x37] sm:$0xff] }
 0x138   : > { %v527_v55 = vmul.f32 %v2195_v47, %v2195_v47  ;;  %v528_v56 = vmul.f32 %v2197_v48, %v2197_v48  ;;  %v529_v57 = vmul.f32 %v2199_v49, %v2199_v49  ;;  %v530_v59 = vmul.f32 %v2201_v50, %v2201_v50 }
 0x139   : > { %v531_v61 = vmul.f32 %v2203_v51, %v2203_v51  ;;  %v532_v63 = vmul.f32 %v2205_v52, %v2205_v52  ;;  %v533_v1 = vmul.f32 %v2207_v53, %v2207_v53  ;;  %v534_v3 = vmul.f32 %v2209_v54, %v2209_v54 }
 0x13a   : > { %v535_v58 = vadd.f32 %v528_v56, %v527_v55  ;;  %v2251_v28 = vmul.f32 %v2230_v18, %v885_v14  ;;  %v2257_v33 = vmul.f32 %v2230_v18, %v887_v16  ;;  %v2263_v35 = vmul.f32 %v2235_v21, %v897_v19  ;;  %v2301_v56 = vld [vmem:[%s2733_s2 + $0x6] ss:$0 sm:$0xff] }
 0x13b   : > { %v2279_v42 = vmul.f32 %v2248_v27, %v1031_v24  ;;  %v2287_v44 = vmul.f32 %v2248_v27, %v1032_v25  ;;  %v2290_v45 = vmul.f32 %v2248_v27, %v1033_v26  ;;  %v2293_v46 = vmul.f32 %v2284_v43, %v1042_v29  ;;  %2767 = vst [vmem:[#allocation11_spill] sm:$0xff] %v2301_v56  ;;  %v2401_v29 = vld [vmem:[%s2733_s2 + $0x4] ss:$0 sm:$0xff] }
 0x13c   : > { %v536_v60 = vadd.f32 %v535_v58, %v529_v57  ;;  %v2296_v55 = vmul.f32 %v2284_v43, %v1043_v30  ;;  %v1641_v57 = vld [vmem:[%s2733_s2 + $0x1] ss:$0 sm:$0xff]  ;;  %2779 = vst [vmem:[#allocation23_spill] sm:$0xff] %v2401_v29 }
 0x13e   : > { %v537_v62 = vadd.f32 %v536_v60, %v530_v59  ;;  %2766 = vst [vmem:[#allocation10_spill] sm:$0xff] %v2296_v55  ;;  %v2307_v59 = vmul.f32 %v2284_v43, %v1044_v31  ;;  %v2310_v60 = vmul.f32 %v2268_v38, %v612_v36 }
 0x140   : > { %v538_v0 = vadd.f32 %v537_v62, %v531_v61  ;;  %2768 = vst [vmem:[#allocation12_spill] sm:$0xff] %v2307_v59  ;;  %2769 = vst [vmem:[#allocation13_spill] sm:$0xff] %v2310_v60  ;;  %v2313_v61 = vmul.f32 %v2301_v56, %v621_v37  ;;  %v2315_v62 = vmul.f32 0.0, %v1641_v57 }
 0x142   : > { %v539_v2 = vadd.f32 %v538_v0, %v532_v63  ;;  %2770 = vst [vmem:[#allocation14_spill] sm:$0xff] %v2313_v61  ;;  %2771 = vst [vmem:[#allocation15_spill] sm:$0xff] %v2315_v62 }
 0x144   : > { %v540_v4 = vadd.f32 %v539_v2, %v533_v1 }
 0x146   : > { %v541_v5 = vadd.f32 %v540_v4, %v534_v3 }
 0x148   : > { %v542_v6 = vrot.slane %v541_v5, 4 }
 0x14a   : > { %v543_v7 = vadd.f32 %v542_v6, %v541_v5 }
 0x14c   : > { %v544_v8 = vrot.slane %v543_v7, 2 }
 0x14e   : > { %v545_v9 = vadd.f32 %v544_v8, %v543_v7 }
 0x150   : > { %v546_v10 = vrot.slane %v545_v9, 1 }
 0x152   : > { %v547_v11 = vadd.f32 %v546_v10, %v545_v9 }
 0x154   : > { %v548_v12 = vmul.f32 0.015625, %v547_v11 }
 0x156   : > { %v549_v13 = vadd.f32 1e-05, %v548_v12 }
 0x158   : > { %1901 = vrsqrt.f32 %v549_v13 }
 0x162   : > { %v1902_v58 = vpop.eup %1901 }
 0x163   : > { %v551_v63 = vmul.f32 %v1902_v58, %v2195_v47  ;;  %v552_v0 = vmul.f32 %v1902_v58, %v2197_v48  ;;  %v553_v1 = vmul.f32 %v1902_v58, %v2199_v49  ;;  %v554_v2 = vmul.f32 %v1902_v58, %v2201_v50  ;;  %v1651_v48 = vld [vmem:[%s2734_s3 + $0x4] ss:$0 sm:$0xff] }
 0x164   : > { %v555_v3 = vmul.f32 %v1902_v58, %v2203_v51  ;;  %v556_v4 = vmul.f32 %v1902_v58, %v2205_v52  ;;  %v557_v5 = vmul.f32 %v1902_v58, %v2207_v53  ;;  %v558_v6 = vmul.f32 %v1902_v58, %v2209_v54  ;;  %v1648_v58 = vld [vmem:[%s2734_s3 + $0x3] ss:$0 sm:$0xff] }
 0x165   : > { %v559_v7 = vmax.f32 %v551_v63, 0.0  ;;  %v2325_v8 = vmax.f32 %v552_v0, 0.0  ;;  %v2327_v9 = vmax.f32 %v553_v1, 0.0  ;;  %v2329_v47 = vmax.f32 %v554_v2, 0.0 }
 0x166   : > { %v2334_v49 = vmax.f32 %v555_v3, 0.0  ;;  %v2336_v50 = vmax.f32 %v556_v4, 0.0  ;;  %v2338_v51 = vmax.f32 %v557_v5, 0.0  ;;  %v2340_v52 = vmax.f32 %v558_v6, 0.0 }
 0x167   : > { %2772 = vst [vmem:[#allocation16_spill] sm:$0xff] %v2325_v8  ;;  %2773 = vst [vmem:[#allocation17_spill] sm:$0xff] %v2327_v9  ;;  %v2345_v53 = vmul.f32 %v1650_v22, %v559_v7  ;;  %v2348_v54 = vmul.f32 %v1650_v22, %v2325_v8  ;;  %v2351_v10 = vmul.f32 %v1650_v22, %v2327_v9 }
 0x168   : > { %2774 = vst [vmem:[#allocation18_spill] sm:$0xff] %v2329_v47  ;;  %2775 = vst [vmem:[#allocation19_spill] sm:$0xff] %v2334_v49  ;;  %v2354_v11 = vmul.f32 %v1650_v22, %v2329_v47  ;;  %v2361_v12 = vmul.f32 %v1650_v22, %v2334_v49  ;;  %v2363_v13 = vmul.f32 %v1651_v48, %v559_v7 }
 0x169   : > { %2776 = vst [vmem:[#allocation20_spill] sm:$0xff] %v2336_v50  ;;  %2777 = vst [vmem:[#allocation21_spill] sm:$0xff] %v2338_v51  ;;  %v2366_v14 = vmul.f32 %v1651_v48, %v2325_v8  ;;  %v2369_v15 = vmul.f32 %v1651_v48, %v2327_v9  ;;  %v2372_v16 = vmul.f32 %v1651_v48, %v2329_v47 }
 0x16a   : > { %2778 = vst [vmem:[#allocation22_spill] sm:$0xff] %v2340_v52  ;;  %603 = vst [vmem:[#allocation2 + $0x50] sm:$0xff] %v559_v7  ;;  %v2375_v17 = vmul.f32 %v1651_v48, %v2334_v49  ;;  %v2378_v19 = vmul.f32 %v1651_v48, %v2336_v50  ;;  %v2381_v20 = vmul.f32 %v1651_v48, %v2338_v51 }
 0x16b   : > { %604 = vst [vmem:[#allocation2 + $0x68] sm:$0xff] %v2325_v8  ;;  %605 = vst [vmem:[#allocation2 + $0x80] sm:$0xff] %v2327_v9  ;;  %v2384_v22 = vmul.f32 %v1651_v48, %v2340_v52  ;;  %v2388_v24 = vmul.f32 %v2243_v23, %v2329_v47  ;;  %v2392_v25 = vmul.f32 %v2243_v23, %v2334_v49 }
 0x16c   : > { %606 = vst [vmem:[#allocation2 + $0x98] sm:$0xff] %v2329_v47  ;;  %607 = vst [vmem:[#allocation2 + $0xb0] sm:$0xff] %v2334_v49  ;;  %v2396_v26 = vmul.f32 %v2243_v23, %v2336_v50  ;;  %v2405_v30 = vmul.f32 %v2243_v23, %v2338_v51  ;;  %v2409_v31 = vmul.f32 %v2243_v23, %v2340_v52 }
 0x16d   : > { %608 = vst [vmem:[#allocation2 + $0xc8] sm:$0xff] %v2336_v50  ;;  %609 = vst [vmem:[#allocation2 + $0xe0] sm:$0xff] %v2338_v51  ;;  %v2411_v36 = vmul.f32 %v1641_v57, %v559_v7  ;;  %v2414_v37 = vmul.f32 %v1641_v57, %v2325_v8  ;;  %v2420_v63 = vmul.f32 %v1641_v57, %v2327_v9 }
 0x16e   : > { %610 = vst [vmem:[#allocation2 + $0xf8] sm:$0xff] %v2340_v52  ;;  %v2423_v0 = vmul.f32 %v1641_v57, %v2329_v47  ;;  %v2426_v1 = vmul.f32 %v1641_v57, %v2334_v49  ;;  %v2429_v23 = vmul.f32 %v1641_v57, %v2336_v50  ;;  %v2432_v2 = vmul.f32 %v1641_v57, %v2338_v51 }
 0x16f   : > { %2780 = vst [vmem:[#allocation24_spill] sm:$0xff] %v2411_v36  ;;  %2781 = vst [vmem:[#allocation25_spill] sm:$0xff] %v2414_v37  ;;  %v2435_v3 = vmul.f32 %v2401_v29, %v559_v7  ;;  %v2439_v4 = vmul.f32 %v2401_v29, %v2325_v8  ;;  %v2443_v5 = vmul.f32 %v2401_v29, %v2327_v9 }
 0x170   : > { %2782 = vst [vmem:[#allocation26_spill] sm:$0xff] %v2420_v63  ;;  %2783 = vst [vmem:[#allocation27_spill] sm:$0xff] %v2423_v0  ;;  %v2451_v57 = vmul.f32 %v2401_v29, %v2334_v49  ;;  %v2455_v7 = vmul.f32 %v2401_v29, %v2336_v50  ;;  %v2459_v8 = vmul.f32 %v2401_v29, %v2338_v51 }
 0x171   : > { %2784 = vst [vmem:[#allocation28_spill] sm:$0xff] %v2426_v1  ;;  %2785 = vst [vmem:[#allocation29_spill] sm:$0xff] %v2429_v23  ;;  %v888_v6 = vld [vmem:[#allocation2 + $0x4d] sm:$0xff]  ;;  %v2447_v23 = vmul.f32 %v2401_v29, %v2329_v47 }
 0x172   : > { %2786 = vst [vmem:[#allocation30_spill] sm:$0xff] %v2432_v2  ;;  %2787 = vst [vmem:[#allocation31_spill] sm:$0xff] %v2435_v3  ;;  %v889_v48 = vld [vmem:[#allocation2 + $0x65] sm:$0xff]  ;;  %v890_v52 = vld [vmem:[#allocation2 + $0x7d] sm:$0xff]  ;;  %v907_v3 = vmul.f32 %v2230_v18, %v888_v6  ;;  %v917_v2 = vmul.f32 %v1648_v58, %v888_v6 }
 0x173   : > { %2788 = vst [vmem:[#allocation32_spill] sm:$0xff] %v2439_v4  ;;  %2789 = vst [vmem:[#allocation33_spill] sm:$0xff] %v2443_v5  ;;  %v891_v9 = vld [vmem:[#allocation2 + $0x95] sm:$0xff]  ;;  %v892_v5 = vld [vmem:[#allocation2 + $0xad] sm:$0xff]  ;;  %v908_v47 = vmul.f32 %v2230_v18, %v889_v48  ;;  %v919_v0 = vmul.f32 %v1648_v58, %v890_v52 }
 0x174   : > { %2790 = vst [vmem:[#allocation34_spill] sm:$0xff] %v2447_v23  ;;  %2791 = vst [vmem:[#allocation35_spill] sm:$0xff] %v2451_v57  ;;  %v893_v4 = vld [vmem:[#allocation2 + $0xc5] sm:$0xff]  ;;  %v909_v23 = vmul.f32 %v2230_v18, %v890_v52  ;;  %v894_v49 = vld [vmem:[#allocation2 + $0xdd] sm:$0xff]  ;;  %v910_v1 = vmul.f32 %v2230_v18, %v891_v9  ;;  %v911_v50 = vmul.f32 %v2230_v18, %v892_v5 }
 0x175   : > { %2792 = vst [vmem:[#allocation36_spill] sm:$0xff] %v2455_v7  ;;  %2793 = vst [vmem:[#allocation37_spill] sm:$0xff] %v2459_v8  ;;  %v895_v57 = vld [vmem:[#allocation2 + $0xf5] sm:$0xff]  ;;  %v918_v7 = vmul.f32 %v1648_v58, %v889_v48  ;;  %v920_v51 = vmul.f32 %v1648_v58, %v891_v9  ;;  %v921_v8 = vmul.f32 %v1648_v58, %v892_v5 }
 0x176   : > { %v922_v29 = vmul.f32 %v1648_v58, %v893_v4  ;;  %v923_v63 = vmul.f32 %v1648_v58, %v894_v49  ;;  %v924_v37 = vmul.f32 %v1648_v58, %v895_v57  ;;  %v925_v36 = vadd.f32 %v917_v2, %v2251_v28  ;;  %v1041_v2 = vld [vmem:[#allocation2 + $0xfb] sm:$0xff] }
 0x177   : > { %v926_v62 = vadd.f32 %v918_v7, %v2254_v32  ;;  %v927_v61 = vadd.f32 %v919_v0, %v2257_v33  ;;  %v928_v6 = vadd.f32 %v920_v51, %v907_v3  ;;  %v929_v56 = vadd.f32 %v921_v8, %v908_v47 }
 0x178   : > { %v930_v60 = vadd.f32 %v922_v29, %v909_v23  ;;  %v931_v38 = vadd.f32 %v923_v63, %v910_v1  ;;  %v932_v59 = vadd.f32 %v924_v37, %v911_v50  ;;  %v938_v18 = vmul.f32 %v2235_v21, %v891_v9  ;;  %v1654_v1 = vld [vmem:[%s2734_s3 + $0x5] ss:$0 sm:$0xff]  ;;  %v1039_v23 = vld [vmem:[#allocation2 + $0xcb] sm:$0xff] }
 0x179   : > { %v939_v52 = vmul.f32 %v2235_v21, %v892_v5  ;;  %v940_v48 = vmul.f32 %v2235_v21, %v893_v4  ;;  %v941_v55 = vmul.f32 %v2235_v21, %v894_v49  ;;  %v942_v58 = vmul.f32 %v2235_v21, %v895_v57 }
 0x17a   : > { %v951_v28 = vadd.f32 %v2260_v34, %v930_v60  ;;  %v952_v32 = vadd.f32 %v2263_v35, %v931_v38  ;;  %v946_v33 = vadd.f32 %v938_v18, %v925_v36  ;;  %v953_v47 = vadd.f32 %v2271_v39, %v932_v59 }
 0x17b   : > { %v947_v51 = vadd.f32 %v939_v52, %v926_v62  ;;  %v948_v8 = vadd.f32 %v940_v48, %v927_v61  ;;  %v949_v50 = vadd.f32 %v941_v55, %v928_v6  ;;  %v950_v29 = vadd.f32 %v942_v58, %v929_v56  ;;  %v1034_v62 = vld [vmem:[#allocation2 + $0x53] sm:$0xff] }
 0x17c   : > { %v986_v9 = vadd.f32 %v2351_v10, %v951_v28  ;;  %v987_v37 = vadd.f32 %v2354_v11, %v952_v32  ;;  %v981_v63 = vadd.f32 %v2273_v40, %v946_v33  ;;  %v988_v34 = vadd.f32 %v2361_v12, %v953_v47  ;;  %v1036_v12 = vld [vmem:[#allocation2 + $0x83] sm:$0xff] }
 0x17d   : > { %v982_v49 = vadd.f32 %v2273_v40, %v947_v51  ;;  %v983_v21 = vadd.f32 %v2273_v40, %v948_v8  ;;  %v984_v35 = vadd.f32 %v2345_v53, %v949_v50  ;;  %v985_v38 = vadd.f32 %v2348_v54, %v950_v29  ;;  %v1035_v40 = vld [vmem:[#allocation2 + $0x6b] sm:$0xff] }
 0x17e   : > { %v1007_v39 = vadd.f32 %v2378_v19, %v986_v9  ;;  %v1008_v55 = vadd.f32 %v2381_v20, %v987_v37  ;;  %v1002_v56 = vadd.f32 %v2363_v13, %v981_v63  ;;  %v1009_v61 = vadd.f32 %v2384_v22, %v988_v34  ;;  %v1037_v19 = vld [vmem:[#allocation2 + $0x9b] sm:$0xff]  ;;  %v1038_v20 = vld [vmem:[#allocation2 + $0xb3] sm:$0xff] }
 0x17f   : > { %v1003_v59 = vadd.f32 %v2366_v14, %v982_v49  ;;  %v1004_v60 = vadd.f32 %v2369_v15, %v983_v21  ;;  %v1005_v10 = vadd.f32 %v2372_v16, %v984_v35  ;;  %v1006_v53 = vadd.f32 %v2375_v17, %v985_v38  ;;  %v613_v37 = vld [vmem:[#allocation2 + $0x4f] sm:$0xff]  ;;  %v614_v35 = vld [vmem:[#allocation2 + $0x67] sm:$0xff]  ;;  %v615_v38 = vld [vmem:[#allocation2 + $0x7f] sm:$0xff] }
 0x180   : > { %v1028_v54 = vadd.f32 %v2276_v41, %v1007_v39  ;;  %v1029_v11 = vadd.f32 %v2276_v41, %v1008_v55  ;;  %v1023_v13 = vadd.f32 %v2388_v24, %v1002_v56  ;;  %v1030_v22 = vadd.f32 %v2276_v41, %v1009_v61  ;;  %v616_v39 = vld [vmem:[#allocation2 + $0x97] sm:$0xff]  ;;  %v2795_v61 = vld [vmem:[#allocation12_spill] sm:$0xff] }
 0x181   : > { %v1024_v14 = vadd.f32 %v2392_v25, %v1003_v59  ;;  %v1025_v15 = vadd.f32 %v2396_v26, %v1004_v60  ;;  %v1026_v36 = vadd.f32 %v2405_v30, %v1005_v10  ;;  %v1027_v16 = vadd.f32 %v2409_v31, %v1006_v53  ;;  %v1040_v30 = vld [vmem:[#allocation2 + $0xe3] sm:$0xff]  ;;  %v2794_v59 = vld [vmem:[#allocation10_spill] sm:$0xff] }
 0x182   : > { %v1053_v17 = vmul.f32 %v2248_v27, %v1034_v62  ;;  %v1054_v0 = vmul.f32 %v2248_v27, %v1035_v40  ;;  %v1055_v24 = vmul.f32 %v2248_v27, %v1036_v12  ;;  %v1056_v25 = vmul.f32 %v2248_v27, %v1037_v19  ;;  %v618_v10 = vld [vmem:[#allocation2 + $0xc7] sm:$0xff]  ;;  %v619_v53 = vld [vmem:[#allocation2 + $0xdf] sm:$0xff] }
 0x183   : > { %v1057_v26 = vmul.f32 %v2248_v27, %v1038_v20  ;;  %v1058_v41 = vadd.f32 %v2279_v42, %v1023_v13  ;;  %v1059_v31 = vadd.f32 %v2287_v44, %v1024_v14  ;;  %v1060_v3 = vadd.f32 %v2290_v45, %v1025_v15 }
 0x184   : > { %v1061_v4 = vadd.f32 %v1053_v17, %v1026_v36  ;;  %v1062_v5 = vadd.f32 %v1054_v0, %v1027_v16  ;;  %v1063_v57 = vadd.f32 %v1055_v24, %v1028_v54  ;;  %v1064_v7 = vadd.f32 %v1056_v25, %v1029_v11  ;;  %v620_v36 = vld [vmem:[#allocation2 + $0xf7] sm:$0xff] }
 0x185   : > { %v1065_v6 = vadd.f32 %v1057_v26, %v1030_v22  ;;  %v1071_v18 = vmul.f32 %v1654_v1, %v1034_v62  ;;  %v1072_v52 = vmul.f32 %v1654_v1, %v1035_v40  ;;  %v1073_v48 = vmul.f32 %v1654_v1, %v1036_v12  ;;  %v617_v40 = vld [vmem:[#allocation2 + $0xaf] sm:$0xff] }
 0x186   : > { %v1074_v58 = vmul.f32 %v1654_v1, %v1037_v19  ;;  %v1075_v28 = vmul.f32 %v1654_v1, %v1038_v20  ;;  %v1076_v27 = vmul.f32 %v1654_v1, %v1039_v23  ;;  %v1077_v32 = vmul.f32 %v1654_v1, %v1040_v30 }
 0x187   : > { %v1078_v42 = vmul.f32 %v1654_v1, %v1041_v2  ;;  %v1079_v33 = vadd.f32 %v1071_v18, %v1058_v41  ;;  %v1080_v51 = vadd.f32 %v1072_v52, %v1059_v31  ;;  %v1081_v8 = vadd.f32 %v1073_v48, %v1060_v3  ;;  %v2797_v3 = vld [vmem:[#allocation13_spill] sm:$0xff] }
 0x188   : > { %v1082_v47 = vadd.f32 %v1074_v58, %v1061_v4  ;;  %v1083_v44 = vadd.f32 %v1075_v28, %v1062_v5  ;;  %v1084_v50 = vadd.f32 %v1076_v27, %v1063_v57  ;;  %v1085_v45 = vadd.f32 %v1077_v32, %v1064_v7  ;;  %v2798_v28 = vld [vmem:[#allocation11_spill] sm:$0xff] }
 0x189   : > { %v1086_v29 = vadd.f32 %v1078_v42, %v1065_v6  ;;  %v1092_v9 = vmul.f32 %v2284_v43, %v1037_v19  ;;  %v1093_v63 = vmul.f32 %v2284_v43, %v1038_v20  ;;  %v1094_v49 = vmul.f32 %v2284_v43, %v1039_v23  ;;  %v2796_v19 = vld [vmem:[#allocation9_spill] sm:$0xff] }
 0x18a   : > { %v1095_v21 = vmul.f32 %v2284_v43, %v1040_v30  ;;  %v1096_v34 = vmul.f32 %v2284_v43, %v1041_v2  ;;  %v2520_v56 = vadd.f32 %v2293_v46, %v1084_v50  ;;  %v2523_v60 = vadd.f32 %v2794_v59, %v1085_v45  ;;  %v1639_v46 = vld [vmem:[%s2733_s2 + $0x3] ss:$0 sm:$0xff] }
 0x18b   : > { %v2517_v55 = vadd.f32 %v1092_v9, %v1079_v33  ;;  %v2526_v62 = vadd.f32 %v2795_v61, %v1086_v29  ;;  %v2528_v54 = vadd.f32 %v1093_v63, %v1080_v51  ;;  %v2530_v43 = vadd.f32 %v1094_v49, %v1081_v8  ;;  %v2801_v61 = vld [vmem:[#allocation24_spill] sm:$0xff] }
 0x18c   : > { %v2532_v11 = vadd.f32 %v1095_v21, %v1082_v47  ;;  %v2534_v12 = vadd.f32 %v1096_v34, %v1083_v44  ;;  %v628_v20 = vmul.f32 %v2796_v19, %v613_v37  ;;  %v629_v13 = vmul.f32 %v2796_v19, %v614_v35  ;;  %v2799_v34 = vld [vmem:[#allocation14_spill] sm:$0xff] }
 0x18d   : > { %v630_v14 = vmul.f32 %v2796_v19, %v615_v38  ;;  %v631_v15 = vmul.f32 %v2796_v19, %v616_v39  ;;  %v1108_v22 = vadd.f32 %v2528_v54, %v2517_v55  ;;  %v632_v16 = vmul.f32 %v2796_v19, %v617_v40 }
 0x18e   : > { %v633_v17 = vmul.f32 %v2796_v19, %v618_v10  ;;  %v634_v0 = vmul.f32 %v2796_v19, %v619_v53  ;;  %v640_v1 = vmul.f32 %v1639_v46, %v613_v37  ;;  %v641_v24 = vmul.f32 %v1639_v46, %v614_v35 }
 0x18f   : > { %v642_v25 = vmul.f32 %v1639_v46, %v615_v38  ;;  %v643_v26 = vmul.f32 %v1639_v46, %v616_v39  ;;  %v1109_v41 = vadd.f32 %v1108_v22, %v2530_v43  ;;  %v644_v23 = vmul.f32 %v1639_v46, %v617_v40  ;;  %v2806_v22 = vld [vmem:[#allocation29_spill] sm:$0xff] }
 0x190   : > { %v645_v30 = vmul.f32 %v1639_v46, %v618_v10  ;;  %v646_v2 = vmul.f32 %v1639_v46, %v619_v53  ;;  %v647_v31 = vmul.f32 %v1639_v46, %v620_v36  ;;  %v648_v4 = vadd.f32 %v640_v1, %v2797_v3  ;;  %v2803_v46 = vld [vmem:[#allocation26_spill] sm:$0xff] }
 0x191   : > { %v649_v5 = vadd.f32 %v641_v24, %v628_v20  ;;  %v650_v57 = vadd.f32 %v642_v25, %v629_v13  ;;  %v1110_v7 = vadd.f32 %v1109_v41, %v2532_v11  ;;  %v651_v6 = vadd.f32 %v643_v26, %v630_v14  ;;  %v2804_v20 = vld [vmem:[#allocation27_spill] sm:$0xff]  ;;  %v2805_v14 = vld [vmem:[#allocation28_spill] sm:$0xff]  ;;  %v2808_v24 = vld [vmem:[#allocation22_spill] sm:$0xff] }
 0x192   : > { %v652_v18 = vadd.f32 %v644_v23, %v631_v15  ;;  %v653_v52 = vadd.f32 %v645_v30, %v632_v16  ;;  %v654_v48 = vadd.f32 %v646_v2, %v633_v17  ;;  %v655_v58 = vadd.f32 %v647_v31, %v634_v0  ;;  %v2807_v16 = vld [vmem:[#allocation30_spill] sm:$0xff]  ;;  %v1643_v0 = vld [vmem:[%s2733_s2 + $0x7] ss:$0 sm:$0xff]  ;;  %v2811_v30 = vld [vmem:[#allocation32_spill] sm:$0xff] }
 0x193   : > { %v661_v27 = vmul.f32 %v2798_v28, %v614_v35  ;;  %v662_v32 = vmul.f32 %v2798_v28, %v615_v38  ;;  %v1111_v42 = vadd.f32 %v1110_v7, %v2534_v12  ;;  %v663_v33 = vmul.f32 %v2798_v28, %v616_v39  ;;  %v2800_v38 = vld [vmem:[#allocation15_spill] sm:$0xff]  ;;  %v2812_v31 = vld [vmem:[#allocation33_spill] sm:$0xff] }
 0x194   : > { %v664_v51 = vmul.f32 %v2798_v28, %v617_v40  ;;  %v665_v8 = vmul.f32 %v2798_v28, %v618_v10  ;;  %v666_v47 = vmul.f32 %v2798_v28, %v619_v53  ;;  %v667_v44 = vmul.f32 %v2798_v28, %v620_v36  ;;  %v2802_v10 = vld [vmem:[#allocation25_spill] sm:$0xff]  ;;  %v2809_v25 = vld [vmem:[#allocation23_spill] sm:$0xff] }
 0x195   : > { %v669_v50 = vadd.f32 %v661_v27, %v648_v4  ;;  %v670_v45 = vadd.f32 %v662_v32, %v649_v5  ;;  %v1112_v29 = vadd.f32 %v1111_v42, %v2520_v56  ;;  %v671_v9 = vadd.f32 %v663_v33, %v650_v57  ;;  %v2810_v41 = vld [vmem:[#allocation31_spill] sm:$0xff]  ;;  %v2813_v4 = vld [vmem:[#allocation34_spill] sm:$0xff]  ;;  %v2817_v27 = vld [vmem:[#allocation16_spill] sm:$0xff] }
 0x196   : > { %v672_v37 = vadd.f32 %v664_v51, %v651_v6  ;;  %v673_v63 = vadd.f32 %v665_v8, %v652_v18  ;;  %v674_v49 = vadd.f32 %v666_v47, %v653_v52  ;;  %v675_v21 = vadd.f32 %v667_v44, %v654_v48  ;;  %v2814_v57 = vld [vmem:[#allocation35_spill] sm:$0xff]  ;;  %v2815_v6 = vld [vmem:[#allocation36_spill] sm:$0xff]  ;;  %v2816_v48 = vld [vmem:[#allocation37_spill] sm:$0xff] }
 0x197   : > { %v676_v35 = vadd.f32 %v2799_v34, %v655_v58  ;;  %v700_v39 = vadd.f32 %v2800_v38, %v669_v50  ;;  %v1113_v59 = vadd.f32 %v1112_v29, %v2523_v60  ;;  %v701_v40 = vadd.f32 %v2801_v61, %v670_v45  ;;  %v2818_v42 = vld [vmem:[#allocation17_spill] sm:$0xff]  ;;  %v2819_v51 = vld [vmem:[#allocation18_spill] sm:$0xff]  ;;  %v2820_v47 = vld [vmem:[#allocation19_spill] sm:$0xff] }
 0x198   : > { %v702_v53 = vadd.f32 %v2802_v10, %v671_v9  ;;  %v703_v19 = vadd.f32 %v2803_v46, %v672_v37  ;;  %v704_v13 = vadd.f32 %v2804_v20, %v673_v63  ;;  %v705_v15 = vadd.f32 %v2805_v14, %v674_v49  ;;  %v2821_v50 = vld [vmem:[#allocation20_spill] sm:$0xff]  ;;  %v2822_v9 = vld [vmem:[#allocation21_spill] sm:$0xff]  ;;  %v1644_v10 = vld [vmem:[%s2733_s2 + $0x2] ss:$0 sm:$0xff] }
 0x199   : > { %v706_v36 = vadd.f32 %v2806_v22, %v675_v21  ;;  %v707_v17 = vadd.f32 %v2807_v16, %v676_v35  ;;  %v1114_v1 = vadd.f32 %v1113_v59, %v2526_v62  ;;  %v720_v26 = vmul.f32 %v2809_v25, %v2808_v24  ;;  %v750_v21 = vld [vmem:[#allocation2 + $0x39] sm:$0xff]  ;;  %v751_v20 = vld [vmem:[#allocation2 + $0x51] sm:$0xff]  ;;  %v753_v22 = vld [vmem:[#allocation2 + $0x81] sm:$0xff] }
 0x19a   : > { %v721_v23 = vadd.f32 %v2810_v41, %v700_v39  ;;  %v722_v2 = vadd.f32 %v2811_v30, %v701_v40  ;;  %v723_v3 = vadd.f32 %v2812_v31, %v702_v53  ;;  %v724_v5 = vadd.f32 %v2813_v4, %v703_v19  ;;  %v755_v16 = vld [vmem:[#allocation2 + $0xb1] sm:$0xff] }
 0x19b   : > { %v725_v7 = vadd.f32 %v2814_v57, %v704_v13  ;;  %v726_v18 = vadd.f32 %v2815_v6, %v705_v15  ;;  %v1115_v52 = vrot.slane %v1114_v1, 4  ;;  %v727_v58 = vadd.f32 %v2816_v48, %v706_v36  ;;  %v2596_v13 = vld [vmem:[%s2733_s2 + $0x5] ss:$0 sm:$0xff]  ;;  %v752_v15 = vld [vmem:[#allocation2 + $0x69] sm:$0xff]  ;;  %v754_v36 = vld [vmem:[#allocation2 + $0x99] sm:$0xff] }
 0x19c   : > { %v728_v28 = vadd.f32 %v720_v26, %v707_v17  ;;  %v734_v32 = vmul.f32 %v1643_v0, %v2817_v27  ;;  %v735_v33 = vmul.f32 %v1643_v0, %v2818_v42  ;;  %v736_v8 = vmul.f32 %v1643_v0, %v2819_v51  ;;  %v756_v17 = vld [vmem:[#allocation2 + $0xc9] sm:$0xff]  ;;  %v1646_v27 = vld [vmem:[%s2733_s2 + $0x8] ss:$0 sm:$0xff] }
 0x19d   : > { %v737_v44 = vmul.f32 %v1643_v0, %v2820_v47  ;;  %v738_v45 = vmul.f32 %v1643_v0, %v2821_v50  ;;  %v1116_v29 = vadd.f32 %v1115_v52, %v1114_v1  ;;  %v739_v37 = vmul.f32 %v1643_v0, %v2822_v9 }
 0x19e   : > { %v740_v63 = vmul.f32 %v1643_v0, %v2808_v24  ;;  %v742_v49 = vadd.f32 %v734_v32, %v721_v23  ;;  %v743_v34 = vadd.f32 %v735_v33, %v722_v2  ;;  %v744_v35 = vadd.f32 %v736_v8, %v723_v3 }
 0x19f   : > { %v745_v38 = vadd.f32 %v737_v44, %v724_v5  ;;  %v746_v39 = vadd.f32 %v738_v45, %v725_v7  ;;  %v1117_v59 = vrot.slane %v1116_v29, 2  ;;  %v747_v61 = vadd.f32 %v739_v37, %v726_v18 }
 0x1a0   : > { %v748_v40 = vadd.f32 %v740_v63, %v727_v58  ;;  %v765_v53 = vmul.f32 %v1644_v10, %v750_v21  ;;  %v741_v19 = vmul.f32 0.0, %v1643_v0  ;;  %v766_v26 = vmul.f32 %v1644_v10, %v751_v20 }
 0x1a1   : > { %v1118_v46 = vadd.f32 %v1117_v59, %v1116_v29  ;;  %v767_v41 = vmul.f32 %v1644_v10, %v752_v15  ;;  %v768_v23 = vmul.f32 %v1644_v10, %v753_v22  ;;  %v769_v30 = vmul.f32 %v1644_v10, %v754_v36 }
 0x1a2   : > { %v773_v1 = vadd.f32 %v765_v53, %v742_v49  ;;  %v749_v25 = vadd.f32 %v741_v19, %v728_v28  ;;  %v786_v0 = vmul.f32 %v2596_v13, %v751_v20  ;;  %v770_v31 = vmul.f32 %v1644_v10, %v755_v16  ;;  %v757_v28 = vld [vmem:[#allocation2 + $0xe1] sm:$0xff]  ;;  %v758_v53 = vld [vmem:[#allocation2 + $0xf9] sm:$0xff] }
 0x1a3   : > { %v1119_v14 = vrot.slane %v1118_v46, 1  ;;  %v771_v3 = vmul.f32 %v1644_v10, %v756_v17  ;;  %v774_v4 = vadd.f32 %v766_v26, %v743_v34  ;;  %v775_v5 = vadd.f32 %v767_v41, %v744_v35 }
 0x1a4   : > { %v776_v57 = vadd.f32 %v768_v23, %v745_v38  ;;  %v787_v7 = vmul.f32 %v2596_v13, %v752_v15  ;;  %v794_v6 = vadd.f32 %v786_v0, %v773_v1  ;;  %v788_v33 = vmul.f32 %v2596_v13, %v753_v22  ;;  %v759_v1 = vld [vmem:[#allocation2 + $0x111] sm:$0xff] }
 0x1a5   : > { %v1120_v24 = vadd.f32 %v1119_v14, %v1118_v46  ;;  %v777_v8 = vadd.f32 %v769_v30, %v746_v39  ;;  %v807_v47 = vmul.f32 %v1646_v27, %v752_v15  ;;  %v808_v50 = vmul.f32 %v1646_v27, %v753_v22 }
 0x1a6   : > { %v795_v51 = vadd.f32 %v787_v7, %v774_v4  ;;  %v778_v45 = vadd.f32 %v770_v31, %v747_v61  ;;  %v790_v29 = vmul.f32 %v2596_v13, %v755_v16  ;;  %v809_v21 = vmul.f32 %v1646_v27, %v754_v36 }
 0x1a7   : > { %v1121_v2 = vmul.f32 0.015625, %v1120_v24  ;;  %v815_v37 = vadd.f32 %v807_v47, %v794_v6  ;;  %v779_v38 = vadd.f32 %v771_v3, %v748_v40  ;;  %v791_v39 = vmul.f32 %v2596_v13, %v756_v17 }
 0x1a8   : > { %v816_v34 = vadd.f32 %v808_v50, %v795_v51  ;;  %v798_v59 = vadd.f32 %v790_v29, %v777_v8  ;;  %v810_v61 = vmul.f32 %v1646_v27, %v755_v16  ;;  %v792_v15 = vmul.f32 %v2596_v13, %v757_v28 }
 0x1a9   : > { %v2601_v18 = vsub.f32 %v2517_v55, %v1121_v2  ;;  %v2604_v52 = vsub.f32 %v2528_v54, %v1121_v2  ;;  %v2607_v48 = vsub.f32 %v2530_v43, %v1121_v2  ;;  %v2610_v58 = vsub.f32 %v2532_v11, %v1121_v2 }
 0x1aa   : > { %v2616_v32 = vsub.f32 %v2534_v12, %v1121_v2  ;;  %v2619_v55 = vsub.f32 %v2520_v56, %v1121_v2  ;;  %v2622_v54 = vsub.f32 %v2523_v60, %v1121_v2  ;;  %v2625_v43 = vsub.f32 %v2526_v62, %v1121_v2 }
 0x1ab   : > { %v1130_v11 = vmul.f32 %v2601_v18, %v2601_v18  ;;  %v1131_v42 = vmul.f32 %v2604_v52, %v2604_v52  ;;  %v772_v12 = vmul.f32 %v1644_v10, %v757_v28  ;;  %v789_v56 = vmul.f32 %v2596_v13, %v754_v36 }
 0x1ac   : > { %v1132_v60 = vmul.f32 %v2607_v48, %v2607_v48  ;;  %v796_v62 = vadd.f32 %v788_v33, %v775_v5  ;;  %v1133_v63 = vmul.f32 %v2610_v58, %v2610_v58  ;;  %v1134_v35 = vmul.f32 %v2616_v32, %v2616_v32 }
 0x1ad   : > { %v1138_v44 = vadd.f32 %v1131_v42, %v1130_v11  ;;  %v797_v9 = vadd.f32 %v789_v56, %v776_v57  ;;  %v823_v19 = vadd.f32 %v816_v34, %v815_v37  ;;  %v1135_v20 = vmul.f32 %v2619_v55, %v2619_v55 }
 0x1ae   : > { %v817_v46 = vadd.f32 %v809_v21, %v796_v62  ;;  %v780_v14 = vadd.f32 %v772_v12, %v749_v25  ;;  %v799_v22 = vadd.f32 %v791_v39, %v778_v45  ;;  %v811_v24 = vmul.f32 %v1646_v27, %v756_v17 }
 0x1af   : > { %v1139_v49 = vadd.f32 %v1138_v44, %v1132_v60  ;;  %v818_v26 = vadd.f32 %v810_v61, %v797_v9  ;;  %v1136_v41 = vmul.f32 %v2622_v54, %v2622_v54  ;;  %v793_v23 = vmul.f32 %v2596_v13, %v758_v53 }
 0x1b0   : > { %v824_v40 = vadd.f32 %v823_v19, %v817_v46  ;;  %v800_v16 = vadd.f32 %v792_v15, %v779_v38  ;;  %v812_v0 = vmul.f32 %v1646_v27, %v757_v28  ;;  %v819_v2 = vadd.f32 %v811_v24, %v798_v59 }
 0x1b1   : > { %v1140_v10 = vadd.f32 %v1139_v49, %v1133_v63  ;;  %v1137_v25 = vmul.f32 %v2625_v43, %v2625_v43  ;;  %v801_v3 = vadd.f32 %v793_v23, %v780_v14  ;;  %v814_v4 = vmul.f32 %v1646_v27, %v759_v1 }
 0x1b2   : > { %v825_v31 = vadd.f32 %v824_v40, %v818_v26  ;;  %v813_v57 = vmul.f32 %v1646_v27, %v758_v53  ;;  %v820_v17 = vadd.f32 %v812_v0, %v799_v22 }
 0x1b3   : > { %v1141_v36 = vadd.f32 %v1140_v10, %v1134_v35  ;;  %v822_v51 = vadd.f32 %v814_v4, %v801_v3 }
 0x1b4   : > { %v826_v7 = vadd.f32 %v825_v31, %v819_v2  ;;  %v821_v11 = vadd.f32 %v813_v57, %v800_v16 }
 0x1b5   : > { %v1142_v30 = vadd.f32 %v1141_v36, %v1135_v20 }
 0x1b6   : > { %v827_v42 = vadd.f32 %v826_v7, %v820_v17 }
 0x1b7   : > { %v1143_v5 = vadd.f32 %v1142_v30, %v1136_v41 }
 0x1b8   : > { %v828_v13 = vadd.f32 %v827_v42, %v821_v11 }
 0x1b9   : > { %v1144_v6 = vadd.f32 %v1143_v5, %v1137_v25 }
 0x1ba   : > { %v829_v8 = vadd.f32 %v828_v13, %v822_v51 }
 0x1bb   : > { %v1145_v33 = vrot.slane %v1144_v6, 4 }
 0x1bc   : > { %v830_v56 = vrot.slane %v829_v8, 4 }
 0x1bd   : > { %v1146_v12 = vadd.f32 %v1145_v33, %v1144_v6 }
 0x1be   : > { %v831_v60 = vadd.f32 %v830_v56, %v829_v8 }
 0x1bf   : > { %v1147_v28 = vrot.slane %v1146_v12, 2 }
 0x1c0   : > { %v832_v62 = vrot.slane %v831_v60, 2 }
 0x1c1   : > { %v1148_v47 = vadd.f32 %v1147_v28, %v1146_v12 }
 0x1c2   : > { %v833_v45 = vadd.f32 %v832_v62, %v831_v60 }
 0x1c3   : > { %v1149_v44 = vrot.slane %v1148_v47, 1 }
 0x1c4   : > { %v834_v27 = vrot.slane %v833_v45, 1 }
 0x1c5   : > { %v1150_v50 = vadd.f32 %v1149_v44, %v1148_v47 }
 0x1c6   : > { %v835_v63 = vadd.f32 %v834_v27, %v833_v45 }
 0x1c7   : > { %v1151_v29 = vmul.f32 0.015625, %v1150_v50 }
 0x1c8   : > { %v836_v49 = vmul.f32 0.015625, %v835_v63 }
 0x1c9   : > { %v1152_v9 = vadd.f32 1e-05, %v1151_v29 }
 0x1ca   : > { %v837_v21 = vsub.f32 %v815_v37, %v836_v49  ;;  %v838_v35 = vsub.f32 %v816_v34, %v836_v49  ;;  %v839_v38 = vsub.f32 %v817_v46, %v836_v49  ;;  %v840_v39 = vsub.f32 %v818_v26, %v836_v49 }
 0x1cb   : > { %1903 = vrsqrt.f32 %v1152_v9  ;;  %v841_v59 = vsub.f32 %v819_v2, %v836_v49  ;;  %v842_v10 = vsub.f32 %v820_v17, %v836_v49  ;;  %v843_v53 = vsub.f32 %v821_v11, %v836_v49 }
 0x1cc   : > { %v844_v61 = vsub.f32 %v822_v51, %v836_v49  ;;  %v845_v19 = vmul.f32 %v837_v21, %v837_v21  ;;  %v846_v20 = vmul.f32 %v838_v35, %v838_v35  ;;  %v847_v14 = vmul.f32 %v839_v38, %v839_v38 }
 0x1cd   : > { %v848_v22 = vmul.f32 %v840_v39, %v840_v39  ;;  %v849_v24 = vmul.f32 %v841_v59, %v841_v59  ;;  %v850_v40 = vmul.f32 %v842_v10, %v842_v10  ;;  %v851_v41 = vmul.f32 %v843_v53, %v843_v53 }
 0x1ce   : > { %v853_v15 = vadd.f32 %v846_v20, %v845_v19 }
 0x1d0   : > { %v854_v36 = vadd.f32 %v853_v15, %v847_v14 }
 0x1d2   : > { %v855_v23 = vadd.f32 %v854_v36, %v848_v22 }
 0x1d4   : > { %v856_v16 = vadd.f32 %v855_v23, %v849_v24 }
 0x1d5   : > { %v1904_v1 = vpop.eup %1903 }
 0x1d6   : > { %v1154_v37 = vmul.f32 %v1904_v1, %v2601_v18  ;;  %v1155_v34 = vmul.f32 %v1904_v1, %v2604_v52  ;;  %v1156_v46 = vmul.f32 %v1904_v1, %v2607_v48  ;;  %v1157_v26 = vmul.f32 %v1904_v1, %v2610_v58 }
 0x1d7   : > { %v1158_v30 = vmul.f32 %v1904_v1, %v2616_v32  ;;  %v1159_v0 = vmul.f32 %v1904_v1, %v2619_v55  ;;  %v1160_v2 = vmul.f32 %v1904_v1, %v2622_v54  ;;  %v857_v5 = vadd.f32 %v856_v16, %v850_v40 }
 0x1d8   : > { %v1162_v31 = vmax.f32 %v1154_v37, 0.0  ;;  %v1163_v25 = vmax.f32 %v1155_v34, 0.0  ;;  %v1164_v3 = vmax.f32 %v1156_v46, 0.0  ;;  %v1165_v4 = vmax.f32 %v1157_v26, 0.0 }
 0x1d9   : > { %v1166_v57 = vmax.f32 %v1158_v30, 0.0  ;;  %v1167_v18 = vmax.f32 %v1159_v0, 0.0  ;;  %v1161_v52 = vmul.f32 %v1904_v1, %v2625_v43  ;;  %v1168_v7 = vmax.f32 %v1160_v2, 0.0 }
 0x1da   : > { %v1190_v17 = vpack.c.bf16 %v1163_v25, %v1162_v31  ;;  %v1191_v48 = vpack.c.bf16 %v1165_v4, %v1164_v3  ;;  %v852_v58 = vmul.f32 %v844_v61, %v844_v61  ;;  %v858_v6 = vadd.f32 %v857_v5, %v851_v41 }
 0x1db   : > { %v1192_v11 = vpack.c.bf16 %v1167_v18, %v1166_v57  ;;  %v1169_v32 = vmax.f32 %v1161_v52, 0.0 }
 0x1dc   : > { %1780 = vmatprep.mubr.bf16.mxu0 %v1190_v17  ;;  %v859_v55 = vadd.f32 %v858_v6, %v852_v58 }
 0x1dd   : > { %1781 = vmatmul.mubr.bf16.vlgmr.msra.gmra.mrb[8].mxu0 %v1191_v48  ;;  %v1193_v54 = vpack.c.bf16 %v1169_v32, %v1168_v7 }
 0x1de   : > { %1784 = vmatprep.mubr.bf16.mxu0 %v1192_v11  ;;  %v860_v42 = vrot.slane %v859_v55, 4 }
 0x1e0   : > { %v861_v33 = vadd.f32 %v860_v42, %v859_v55 }
 0x1e2   : > { %v862_v51 = vrot.slane %v861_v33, 2 }
 0x1e4   : > { %v863_v13 = vadd.f32 %v862_v51, %v861_v33  ;;  %v1450_v51 = vld [vmem:[%s2737_s6] sm:$0xff] }
 0x1e5   : > { %1785 = vmatmul.mubr.bf16.gmra.mrb[12].mxu0 %v1193_v54 }
 0x1e6   : > { %v864_v12 = vrot.slane %v863_v13, 1 }
 0x1e8   : > { %v865_v8 = vadd.f32 %v864_v12, %v863_v13 }
 0x1ea   : > { %v866_v43 = vmul.f32 0.015625, %v865_v8  ;;  %v2011_v8 = vmov 0  }
 0x1eb   : > { %1877 = vset.pattern.permute.xlu0 %v2011_v8 }
 0x1ec   : > { %v867_v28 = vadd.f32 1e-05, %v866_v43  ;;  %v1454_v43 = vld [vmem:[%s2738_s7] sm:$0xff] }
 0x1ee   : > { %1905 = vrsqrt.f32 %v867_v28 }
 0x1f8   : > { %v1906_v56 = vpop.eup %1905 }
 0x1f9   : > { %v869_v47 = vmul.f32 %v1906_v56, %v837_v21  ;;  %v870_v60 = vmul.f32 %v1906_v56, %v838_v35  ;;  %v871_v44 = vmul.f32 %v1906_v56, %v839_v38  ;;  %v872_v62 = vmul.f32 %v1906_v56, %v840_v39 }
 0x1fa   : > { %v873_v50 = vmul.f32 %v1906_v56, %v841_v59  ;;  %v874_v45 = vmul.f32 %v1906_v56, %v842_v10  ;;  %v875_v29 = vmul.f32 %v1906_v56, %v843_v53  ;;  %v876_v27 = vmul.f32 %v1906_v56, %v844_v61 }
 0x1fb   : > { %v877_v9 = vmax.f32 %v869_v47, 0.0  ;;  %v878_v63 = vmax.f32 %v870_v60, 0.0  ;;  %v879_v49 = vmax.f32 %v871_v44, 0.0  ;;  %v880_v19 = vmax.f32 %v872_v62, 0.0  ;;  %v1457_v60 = vld [vmem:[%s2739_s8] sm:$0xff] }
 0x1fc   : > { %v881_v20 = vmax.f32 %v873_v50, 0.0  ;;  %v882_v14 = vmax.f32 %v874_v45, 0.0  ;;  %v883_v15 = vmax.f32 %v875_v29, 0.0  ;;  %v884_v22 = vmax.f32 %v876_v27, 0.0 }
 0x1fd   : > { %v1170_v36 = vpack.c.bf16 %v878_v63, %v877_v9  ;;  %v1171_v1 = vpack.c.bf16 %v880_v19, %v879_v49  ;;  %v1470_v63 = vld [vmem:[%s2740_s9] sm:$0x1] }
 0x1fe   : > { %v1172_v24 = vpack.c.bf16 %v882_v14, %v881_v20  ;;  %v1173_v40 = vpack.c.bf16 %v884_v22, %v883_v15  ;;  %v1478_v22 = vlaneseq }
 0x1ff   : > { %1804 = vmatprep.mubr.bf16.mxu1 %v1170_v36 }
 0x200   : > { %1805 = vmatmul.mubr.bf16.vlgmr.msra.gmra.mrb[0].mxu1 %v1171_v1  ;;  %v1479_v36 = vshrl.u32 %v1478_v22, 7 }
 0x201   : > { %1808 = vmatprep.mubr.bf16.mxu1 %v1172_v24 }
 0x202   : > { %v1480_v1 = vsub.s32 0, %v1479_v36 }
 0x208   : > { %1809 = vmatmul.mubr.bf16.gmra.mrb[4].mxu1 %v1173_v40 }
 0x2b0   : > { %v1782_v21 = vpop.f32.mrb[8].mxu0 }
 0x2b1   : > { %v1292_v35 = vpop.f32.mrb[9].mxu0 }
 0x2b2   : > { %v1783_v38 = vpop.f32.mrb[10].mxu0 }
 0x2b3   : > { %v1295_v39 = vpop.f32.mrb[11].mxu0 }
 0x2b8   : > { %v1786_v59 = vpop.f32.mrb[12].mxu0 }
 0x2b9   : > { %v1308_v10 = vpop.f32.mrb[13].mxu0 }
 0x2ba   : > { %v1787_v53 = vpop.f32.mrb[14].mxu0 }
 0x2bb   : > { %v1311_v61 = vpop.f32.mrb[15].mxu0 }
 0x2d3   : > { %v1806_v41 = vpop.f32.mrb[0].mxu1 }
 0x2d4   : > { %v2657_v23 = vadd.f32 %v1806_v41, %v1782_v21  ;;  %v1405_v37 = vpop.f32.mrb[1].mxu1 }
 0x2d5   : > { %v2659_v34 = vadd.f32 %v1405_v37, %v1292_v35  ;;  %v1807_v46 = vpop.f32.mrb[2].mxu1 }
 0x2d6   : > { %v2661_v26 = vadd.f32 %v1807_v46, %v1783_v38  ;;  %v1408_v16 = vpop.f32.mrb[3].mxu1 }
 0x2d7   : > { %v1409_v30 = vadd.f32 %v1408_v16, %v1295_v39 }
 0x2d9   : > { %v1436_v0 = vadd.f32 %v1409_v30, %v2659_v34 }
 0x2db   : > { %v1437_v2 = vadd.f32 %v1436_v0, %v2657_v23  ;;  %v1810_v31 = vpop.f32.mrb[4].mxu1 }
 0x2dc   : > { %v1430_v25 = vadd.f32 %v1810_v31, %v1786_v59  ;;  %v1421_v3 = vpop.f32.mrb[5].mxu1 }
 0x2dd   : > { %v1422_v4 = vadd.f32 %v1421_v3, %v1308_v10  ;;  %v1438_v5 = vadd.f32 %v1437_v2, %v2661_v26  ;;  %v1811_v57 = vpop.f32.mrb[6].mxu1 }
 0x2de   : > { %v1433_v18 = vadd.f32 %v1811_v57, %v1787_v53  ;;  %v1424_v52 = vpop.f32.mrb[7].mxu1 }
 0x2df   : > { %v1439_v17 = vadd.f32 %v1438_v5, %v1422_v4  ;;  %v1425_v48 = vadd.f32 %v1424_v52, %v1311_v61 }
 0x2e1   : > { %v1440_v7 = vadd.f32 %v1439_v17, %v1425_v48 }
 0x2e3   : > { %v1441_v58 = vadd.f32 %v1440_v7, %v1430_v25 }
 0x2e5   : > { %v1442_v6 = vadd.f32 %v1441_v58, %v1433_v18 }
 0x2e7   : > { %v1443_v11 = vrot.slane %v1442_v6, 4 }
 0x2e9   : > { %v1444_v32 = vadd.f32 %v1443_v11, %v1442_v6 }
 0x2eb   : > { %v1445_v55 = vrot.slane %v1444_v32, 2 }
 0x2ed   : > { %v1446_v54 = vadd.f32 %v1445_v55, %v1444_v32 }
 0x2ef   : > { %v1447_v42 = vrot.slane %v1446_v54, 1 }
 0x2f1   : > { %v1448_v33 = vadd.f32 %v1447_v42, %v1446_v54 }
 0x2f3   : > { %v1449_v13 = vmul.f32 0.015625, %v1448_v33 }
 0x2f5   : > { %v1451_v12 = vmul.f32 %v1450_v51, %v1449_v13 }
 0x2f7   : > { %1452 = vadd.xlane.f32.xlu0 %v1451_v12 }
 0x384   : > { %v1453_v28 = vpop.xlane.xlu0 %1452 }
 0x385   : > { %v1455_v56 = vadd.f32 %v1454_v43, %v1453_v28 }
 0x387   : > { %v1456_v47 = vmax.f32 %v1455_v56, 0.0 }
 0x389   : > { %1460 = vperm.xlu0 %1877, %v1456_v47  }
 0x408   : > { %v1461_v44 = vpop.permute.xlu0 %1460 }
 0x409   : > { %v1463_v62 = vmul.f32 %v1461_v44, %v1457_v60 }
 0x40b   : > { %v1464_v50 = vrot.slane %v1463_v62, 4 }
 0x40d   : > { %v1465_v45 = vadd.f32 %v1464_v50, %v1463_v62 }
 0x40f   : > { %v1466_v29 = vrot.slane %v1465_v45, 2 }
 0x411   : > { %v1467_v27 = vadd.f32 %v1466_v29, %v1465_v45 }
 0x413   : > { %v1468_v9 = vrot.slane %v1467_v27, 1 }
 0x415   : > { %v1469_v49 = vadd.f32 %v1468_v9, %v1467_v27 }
 0x417   : > { %v1471_v19 = vadd.f32 %v1470_v63, %v1469_v49 }
 0x419   : > { %v1672_v20 = vmul.f32 -1.442695, %v1471_v19 }
 0x41b   : > { %1907 = vpow2.f32 %v1672_v20 }
 0x425   : > { %v1908_v14 = vpop.eup %1907 }
 0x426   : > { %v1475_v15 = vadd.f32 1.0, %v1908_v14 }
 0x428   : > { %1909 = vrcp.f32 %v1475_v15 }
 0x432   : > { %v1910_v24 = vpop.eup %1909 }
 0x433   : > { %v1481_v40 = vrot.slane %v1910_v24, %v1480_v1 }
 0x435   : > { %v1482_v21 = vmul.f32 %v1481_v40, %v2659_v34  ;;  %v1483_v35 = vmul.f32 %v1481_v40, %v1409_v30  ;;  %v1484_v38 = vmul.f32 %v1481_v40, %v2657_v23  ;;  %v1485_v39 = vmul.f32 %v1481_v40, %v2661_v26 }
 0x436   : > { %v1486_v59 = vmul.f32 %v1481_v40, %v1422_v4  ;;  %v1487_v10 = vmul.f32 %v1481_v40, %v1425_v48  ;;  %v1488_v53 = vmul.f32 %v1481_v40, %v1430_v25  ;;  %v1489_v61 = vmul.f32 %v1481_v40, %v1433_v18 }
 0x437   : > { %v1699_v41 = vpack.c.bf16 %v1483_v35, %v1482_v21  ;;  %v1704_v37 = vpack.c.bf16 %v1485_v39, %v1484_v38 }
 0x438   : > { %v1709_v23 = vpack.c.bf16 %v1487_v10, %v1486_v59  ;;  %v1714_v34 = vpack.c.bf16 %v1489_v61, %v1488_v53 }
 0x439   : > { %1700 = vst [vmem:[%s367_s29] sm:$0xff] %v1699_v41   ;;  %1716 = vst [vmem:[%s367_s29 + $0x8] sm:$0xff] %v1704_v37  }
 0x43a   : > { %1717 = vst [vmem:[%s367_s29 + $0x10] sm:$0xff] %v1709_v23   ;;  %1718 = vst [vmem:[%s367_s29 + $0x18] sm:$0xff] %v1714_v34  }
 0x43b   : > { %1952 = shalt.err (!%p1949_p7)
}
 0x43c   : > { %s1953_s12 = scalar_lea.hbm %s2686_s17, 512  ;;  %s1957_s18 = scalar_lea.hbm %s2741_s10, 1024 }
 0x43d   : > { %p1954_p8 = scmp.ne.s32.totalorder %s2686_s17, %s1953_s12  ;;  %p1958_p1 = scmp.lt.u32.totalorder %s2686_s17, %s2741_s10 }
 0x43e   : > { %p1959_p0 = scmp.lt.u32.totalorder %s1957_s18, %s1953_s12  ;;  %p1961_p6 = scmp.lt.u32.totalorder %s1953_s12, %s2686_s17 }
 0x43f   : > { %p1955_p11 = pnand %p1954_p8, %p2823_p9 }
 0x440   : > { %p1960_p5 = por %p1959_p0, %p1958_p1 }
 0x441   : > { %p1956_p13 = pneg %p1955_p11 }
 0x442   : > { %p1962_p10 = por %p1961_p6, %p1960_p5 }
 0x444   : > { %p1963_p12 = pnand %p1962_p10, %p1956_p13 }
 0x446   : > { %1966 = shalt.err (!%p1963_p12)
}
 0x447   : > { %s2013_s21 = smov 64   ;;  %s2014_s26 = smov 4  }
 0x448   : > { %1825 = dma.vmem_to_hbm [thread:$0]  (%p2823_p9), %s2688_s30, 512, %s2686_s17, %s2690_s20, %s2013_s21, %s2013_s21, %s2014_s26  }
 0x449 PF: > { %p1837_p2 = scmp.ge.s32.totalorder %s2005_s16, 2  ;;  %s1559_s27 = sand.u32 1, %s1993_s13  }
 0x44a   : > { %p2824_p3 = scmp.ne.s32.totalorder %s2759_s24, 0  ;;  %s1560_s12 = scalar_lea.sflag [#allocation5], %s1559_s27 }
 0x44c   : > { %p1832_p4 = pnand %p1837_p2, %p2824_p3 }
 0x44e   : > { %1988 = dma.done.wait (!%p1832_p4), %s1560_s12, 512  }
 0x44f   : > { %1990 = vsyncadd (!%p1832_p4), %s1560_s12, 4294966784  ;;  %p21_p7 = scmp.ge.s32.totalorder %s2095_s19, 4   ;;  %s2825_s13 = smov %s1997_s14 }
 0x450   : > { %s2826_s14 = smov %s2001_s15  ;;  %s2827_s15 = smov %s2106_s22 }
 0x451   : > { %s2828_s16 = smov %s2095_s19  ;;  %23 = sbr.rel (!%p21_p7) target bundleno = 4 (0x4), region = 103 }
 0x458   :  { %1565 = vsyncpa [#allocation4], 1 }
 0x459   :  { %1567 = vsyncpa [#allocation4 + $0x1], 1 }
 0x45a   :  { %1568 = vsyncpa [#allocation5], 1 }
 0x45b   :  { %1570 = vsyncpa [#allocation5 + $0x1], 1 }

</bundles_post_ra>
